<compile_context>
chip_gen: v5e
topology: v5e:2x2
jax: 0.10.0
libtpu: 0.0.40
codegen_flags: <defaults>
</compile_context>

<pallas_src>
import functools

import jax
import jax.numpy as jnp
from jax.experimental import pallas as pl


# ----------------------------------------------------------------------------
# Single fused kernel: multi-layer LSTM recurrence + final Linear.
# ----------------------------------------------------------------------------
def _fused_lstm_fc_kernel(x_ref, wih0_ref, whh0_ref, wihL_ref, whhL_ref,
                          bias_ref, wfc_ref, bfc_ref, out_ref, *, batch):
    TB, I = x_ref.shape
    B = batch
    T = TB // B
    H = whh0_ref.shape[0]
    G = 4 * H
    L = bias_ref.shape[0]
    O = wfc_ref.shape[1]

    whh0 = whh0_ref[...]                                         # (H, 4H)

    # Layer-0 input contribution for ALL timesteps in one MXU pass (time-major
    # flattened rows): (T*B, I) @ (I, 4H) + b0, then viewed as (T, B, 4H) so
    # the per-step read xg0[t] is a clean leading-axis slab select.
    xg0 = (jnp.dot(x_ref[...], wih0_ref[...],
                   preferred_element_type=jnp.float32)
           + bias_ref[0]).reshape(T, B, G)

    # Hoisted per-layer (>= 1) weights and pre-broadcast biases.
    wih_up = [wihL_ref[l] for l in range(L - 1)]                 # (H, 4H) each
    whh_up = [whhL_ref[l] for l in range(L - 1)]                 # (H, 4H) each
    bias_up = [jnp.broadcast_to(bias_ref[l + 1], (B, G)) for l in range(L - 1)]

    # Lane mask for the "g" gate (lanes [2H, 3H)), hoisted out of the loop.
    lane = jax.lax.broadcasted_iota(jnp.int32, (B, G), 1)
    g_mask = (lane >= 2 * H) & (lane < 3 * H)

    def cell(gates, c_prev):
        # Everything feeding the g lanes was pre-scaled by 2 in the wrapper,
        # so one sigmoid pass suffices: tanh(z) = 2*sigmoid(2z) - 1.
        act = jax.nn.sigmoid(gates)
        act = jnp.where(g_mask, 2.0 * act - 1.0, act)
        i_g = act[:, 0 * H:1 * H]
        f_g = act[:, 1 * H:2 * H]
        g_g = act[:, 2 * H:3 * H]
        o_g = act[:, 3 * H:4 * H]
        c_new = f_g * c_prev + i_g * g_g
        h_new = o_g * jnp.tanh(c_new)
        return h_new, c_new

    # Per-layer hidden / cell states carried as live values (all in vregs /
    # VMEM inside this single invocation).
    h = [jnp.zeros((B, H), jnp.float32) for _ in range(L)]
    c = [jnp.zeros((B, H), jnp.float32) for _ in range(L)]
    tops = []

    for t in range(T):                           # static T -> fully unrolled
        # Layer 0: precomputed x-part + recurrent part (only h @ W_hh stays on
        # the serial path).
        gates0 = xg0[t] + jnp.dot(h[0], whh0,
                                  preferred_element_type=jnp.float32)
        h[0], c[0] = cell(gates0, c[0])
        inp = h[0]
        # Layers >= 1: two MXU pushes per step, no lane concat.
        for l in range(1, L):
            gates = (jnp.dot(inp, wih_up[l - 1],
                             preferred_element_type=jnp.float32)
                     + jnp.dot(h[l], whh_up[l - 1],
                               preferred_element_type=jnp.float32)
                     + bias_up[l - 1])
            h[l], c[l] = cell(gates, c[l])
            inp = h[l]
        tops.append(inp)                         # top-layer h_t stays live

    # One concatenate + one dense FC matmul + one store.
    h_all = jnp.concatenate(tops, axis=0)                        # (T*B, H)
    out2d = (jnp.dot(h_all, wfc_ref[...], preferred_element_type=jnp.float32)
             + bfc_ref[...])                                     # (T*B, O)
    out_ref[...] = out2d.astype(out_ref.dtype)


def fused_lstm_fc(x2d, batch, wih0_t, whh0_t, wihL, whhL, biases, wfc_t, bfc):
    """x2d: (T*B, I) time-major flattened; wih0_t: (I,4H); whh0_t: (H,4H);
    wihL/whhL: (max(L-1,1), H, 4H); biases: (L,1,4H); wfc_t: (H,O); bfc: (1,O).
    Returns (T*B, O)."""
    TB, I = x2d.shape
    H = whh0_t.shape[0]
    G = 4 * H
    L = biases.shape[0]
    Lm1 = wihL.shape[0]
    O = wfc_t.shape[1]

    kernel = functools.partial(_fused_lstm_fc_kernel, batch=batch)
    return pl.pallas_call(
        kernel,
        out_shape=jax.ShapeDtypeStruct((TB, O), jnp.float32),
        in_specs=[
            pl.BlockSpec((TB, I), lambda: (0, 0)),
            pl.BlockSpec((I, G), lambda: (0, 0)),
            pl.BlockSpec((H, G), lambda: (0, 0)),
            pl.BlockSpec((Lm1, H, G), lambda: (0, 0, 0)),
            pl.BlockSpec((Lm1, H, G), lambda: (0, 0, 0)),
            pl.BlockSpec((L, 1, G), lambda: (0, 0, 0)),
            pl.BlockSpec((H, O), lambda: (0, 0)),
            pl.BlockSpec((1, O), lambda: (0, 0)),
        ],
        out_specs=pl.BlockSpec((TB, O), lambda: (0, 0)),
    )(x2d, wih0_t, whh0_t, wihL, whhL, biases, wfc_t, bfc)


# ----------------------------------------------------------------------------
# Parameters (PyTorch nn.LSTM / nn.Linear conventions) and forward wrapper.
# ----------------------------------------------------------------------------
def init_params(key, input_size, hidden_size, num_layers, output_size):
    params = {"lstm": [], "fc": {}}
    k = 1.0 / jnp.sqrt(hidden_size)
    for layer in range(num_layers):
        in_sz = input_size if layer == 0 else hidden_size
        key, k1, k2, k3, k4 = jax.random.split(key, 5)
        params["lstm"].append({
            "w_ih": jax.random.uniform(k1, (4 * hidden_size, in_sz),
                                       jnp.float32, -k, k),
            "w_hh": jax.random.uniform(k2, (4 * hidden_size, hidden_size),
                                       jnp.float32, -k, k),
            "b_ih": jax.random.uniform(k3, (4 * hidden_size,),
                                       jnp.float32, -k, k),
            "b_hh": jax.random.uniform(k4, (4 * hidden_size,),
                                       jnp.float32, -k, k),
        })
    key, k1, k2 = jax.random.split(key, 3)
    params["fc"]["w"] = jax.random.uniform(
        k1, (output_size, hidden_size), jnp.float32, -k, k)
    params["fc"]["b"] = jax.random.uniform(
        k2, (output_size,), jnp.float32, -k, k)
    return params


@jax.jit
def model_forward(params, x, x_mark_enc=None, x_dec=None, x_mark_dec=None):
    """x: (B, T, input_size) batch-first, as in the PyTorch module.
    Returns (B, T, output_size)."""
    del x_mark_enc, x_dec, x_mark_dec  # unused, matching the reference forward
    x = x.astype(jnp.float32)
    lstm = params["lstm"]
    L = len(lstm)
    H = lstm[0]["w_hh"].shape[1]
    G = 4 * H
    O = params["fc"]["w"].shape[0]
    B, T, _ = x.shape

    # Pre-scale everything feeding the g-gate lanes by 2 so the kernel uses a
    # single sigmoid pass per cell (tanh(z) = 2*sigmoid(2z) - 1).
    gate_scale = jnp.concatenate([
        jnp.ones((2 * H,), jnp.float32),
        jnp.full((H,), 2.0, jnp.float32),
        jnp.ones((H,), jnp.float32)])                              # (4H,)

    wih0_t = jnp.transpose(lstm[0]["w_ih"]) * gate_scale           # (I, 4H)
    whh0_t = jnp.transpose(lstm[0]["w_hh"]) * gate_scale           # (H, 4H)
    biases = jnp.stack(
        [((p["b_ih"] + p["b_hh"]) * gate_scale).reshape(1, G) for p in lstm],
        axis=0)                                                    # (L, 1, 4H)
    if L > 1:
        wihL = jnp.stack([jnp.transpose(p["w_ih"]) * gate_scale
                          for p in lstm[1:]], axis=0)              # (L-1,H,4H)
        whhL = jnp.stack([jnp.transpose(p["w_hh"]) * gate_scale
                          for p in lstm[1:]], axis=0)              # (L-1,H,4H)
    else:
        wihL = jnp.zeros((1, H, G), jnp.float32)                   # unused
        whhL = jnp.zeros((1, H, G), jnp.float32)                   # unused
    wfc_t = jnp.transpose(params["fc"]["w"])                       # (H, O)
    bfc = params["fc"]["b"].reshape(1, O)

    # Time-major flattened input (tiny XLA ops outside the kernel).
    x2d = jnp.transpose(x, (1, 0, 2)).reshape(T * B, -1)           # (T*B, I)

    # dropout(p=0.3) in eval mode is identity.
    out2d = fused_lstm_fc(x2d, B, wih0_t, whh0_t, wihL, whhL, biases,
                          wfc_t, bfc)                              # (T*B, O)
    return jnp.transpose(out2d.reshape(T, B, O), (1, 0, 2))        # (B, T, O)


# ----------------------------------------------------------------------------
# Pure-JAX reference (for correctness check).
# ----------------------------------------------------------------------------
def reference_forward(params, x):
    h_seq = x.astype(jnp.float32)
    for lp in params["lstm"]:
        wih, whh = lp["w_ih"], lp["w_hh"]
        b = lp["b_ih"] + lp["b_hh"]
        B, T, _ = h_seq.shape
        H = whh.shape[1]

        def step(carry, x_t):
            hp, cp = carry
            gates = x_t @ wih.T + hp @ whh.T + b
            i = jax.nn.sigmoid(gates[:, 0 * H:1 * H])
            f = jax.nn.sigmoid(gates[:, 1 * H:2 * H])
            g = jnp.tanh(gates[:, 2 * H:3 * H])
            o = jax.nn.sigmoid(gates[:, 3 * H:4 * H])
            c = f * cp + i * g
            hn = o * jnp.tanh(c)
            return (hn, c), hn

        x_tm = jnp.transpose(h_seq, (1, 0, 2))
        init = (jnp.zeros((B, H), jnp.float32), jnp.zeros((B, H), jnp.float32))
        _, ys = jax.lax.scan(step, init, x_tm)
        h_seq = jnp.transpose(ys, (1, 0, 2))
    return h_seq @ params["fc"]["w"].T + params["fc"]["b"]


if __name__ == "__main__":
    configs = {
        "seq_len": 8,
        "pred_len": 8,
        "input_size": 4,
        "hidden_size": 32,
        "num_layers": 2,
        "output_size": 4,
    }
    B = 2
    key = jax.random.PRNGKey(0)
    key, kp, kx = jax.random.split(key, 3)
    params = init_params(kp, configs["input_size"], configs["hidden_size"],
                         configs["num_layers"], configs["output_size"])
    x = jax.random.normal(
        kx, (B, configs["seq_len"], configs["input_size"]), jnp.float32)
    x_mark_enc = jnp.zeros((B, configs["seq_len"], 1), jnp.float32)
    x_dec = jnp.zeros((B, configs["pred_len"], configs["input_size"]),
                      jnp.float32)
    x_mark_dec = jnp.zeros((B, configs["pred_len"], 1), jnp.float32)

    out = model_forward(params, x, x_mark_enc, x_dec, x_mark_dec)
    jax.block_until_ready(out)
    assert out.shape == (B, configs["seq_len"], configs["output_size"])

    ref = reference_forward(params, x)
    assert jnp.max(jnp.abs(out - ref)) < 1e-3, "mismatch vs pure-JAX reference"
    print("KERNEL_OK")
</pallas_src>

<mosaic_0001>
module attributes {stable_mosaic.version = 11 : i64} {
  func.func @_fused_lstm_fc_kernel(%arg0: memref<16x4xf32, #tpu.memory_space<vmem>>, %arg1: memref<4x128xf32, #tpu.memory_space<vmem>>, %arg2: memref<32x128xf32, #tpu.memory_space<vmem>>, %arg3: memref<1x32x128xf32, #tpu.memory_space<vmem>>, %arg4: memref<1x32x128xf32, #tpu.memory_space<vmem>>, %arg5: memref<2x1x128xf32, #tpu.memory_space<vmem>>, %arg6: memref<32x4xf32, #tpu.memory_space<vmem>>, %arg7: memref<1x4xf32, #tpu.memory_space<vmem>>, %arg8: memref<16x4xf32, #tpu.memory_space<vmem>>) attributes {dimension_semantics = [], scalar_prefetch = 0 : i64, scratch_operands = 0 : i64, tpu.core_type = #tpu.core_type<tc>} {
    %c0 = arith.constant 0 : index
    %c0_0 = arith.constant 0 : index
    %0 = vector.load %arg2[%c0, %c0_0] : memref<32x128xf32, #tpu.memory_space<vmem>>, vector<32x128xf32>
    %c0_1 = arith.constant 0 : index
    %c0_2 = arith.constant 0 : index
    %1 = vector.load %arg0[%c0_1, %c0_2] : memref<16x4xf32, #tpu.memory_space<vmem>>, vector<16x4xf32>
    %c0_3 = arith.constant 0 : index
    %c0_4 = arith.constant 0 : index
    %2 = vector.load %arg1[%c0_3, %c0_4] : memref<4x128xf32, #tpu.memory_space<vmem>>, vector<4x128xf32>
    %cst = arith.constant dense<0.000000e+00> : vector<16x128xf32>
    %3 = tpu.matmul %1, %2, %cst {dimension_numbers = #tpu.dot_dimension_numbers<[1], [0], [0], [1], [0, 0, 1, 1], [], []>} : vector<16x4xf32>, vector<4x128xf32>, vector<16x128xf32> -> vector<16x128xf32>
    %c0_5 = arith.constant 0 : index
    %c0_6 = arith.constant 0 : index
    %c0_7 = arith.constant 0 : index
    %4 = vector.load %arg5[%c0_5, %c0_6, %c0_7] : memref<2x1x128xf32, #tpu.memory_space<vmem>>, vector<1x1x128xf32>
    %5 = vector.shape_cast %4 : vector<1x1x128xf32> to vector<1x128xf32>
    %6 = vector.broadcast %5 : vector<1x128xf32> to vector<16x128xf32>
    %7 = arith.addf %3, %6 : vector<16x128xf32>
    %8 = vector.shape_cast %7 : vector<16x128xf32> to vector<8x2x128xf32>
    %c0_8 = arith.constant 0 : index
    %c0_9 = arith.constant 0 : index
    %c0_10 = arith.constant 0 : index
    %9 = vector.load %arg3[%c0_8, %c0_9, %c0_10] : memref<1x32x128xf32, #tpu.memory_space<vmem>>, vector<1x32x128xf32>
    %10 = vector.shape_cast %9 : vector<1x32x128xf32> to vector<32x128xf32>
    %c0_11 = arith.constant 0 : index
    %c0_12 = arith.constant 0 : index
    %c0_13 = arith.constant 0 : index
    %11 = vector.load %arg4[%c0_11, %c0_12, %c0_13] : memref<1x32x128xf32, #tpu.memory_space<vmem>>, vector<1x32x128xf32>
    %12 = vector.shape_cast %11 : vector<1x32x128xf32> to vector<32x128xf32>
    %c1 = arith.constant 1 : index
    %c0_14 = arith.constant 0 : index
    %c0_15 = arith.constant 0 : index
    %13 = vector.load %arg5[%c1, %c0_14, %c0_15] : memref<2x1x128xf32, #tpu.memory_space<vmem>>, vector<1x1x128xf32>
    %14 = vector.shape_cast %13 : vector<1x1x128xf32> to vector<1x128xf32>
    %15 = vector.shape_cast %14 : vector<1x128xf32> to vector<1x128xf32>
    %16 = vector.broadcast %15 : vector<1x128xf32> to vector<2x128xf32>
    %17 = tpu.iota {dimensions = array<i32: 1>} : vector<2x128xi32>
    %c64_i32 = arith.constant 64 : i32
    %18 = vector.broadcast %c64_i32 : i32 to vector<2x128xi32>
    %19 = arith.cmpi sge, %17, %18 : vector<2x128xi32>
    %c96_i32 = arith.constant 96 : i32
    %20 = vector.broadcast %c96_i32 : i32 to vector<2x128xi32>
    %21 = arith.cmpi slt, %17, %20 : vector<2x128xi32>
    %22 = arith.andi %19, %21 : vector<2x128xi1>
    %cst_16 = arith.constant 0.000000e+00 : f32
    %23 = vector.broadcast %cst_16 : f32 to vector<2x32xf32>
    %cst_17 = arith.constant 0.000000e+00 : f32
    %24 = vector.broadcast %cst_17 : f32 to vector<2x32xf32>
    %cst_18 = arith.constant 0.000000e+00 : f32
    %25 = vector.broadcast %cst_18 : f32 to vector<2x32xf32>
    %cst_19 = arith.constant 0.000000e+00 : f32
    %26 = vector.broadcast %cst_19 : f32 to vector<2x32xf32>
    %27 = vector.extract_strided_slice %8 {offsets = [0, 0, 0], sizes = [1, 2, 128], strides = [1, 1, 1]} : vector<8x2x128xf32> to vector<1x2x128xf32>
    %28 = vector.shape_cast %27 : vector<1x2x128xf32> to vector<2x128xf32>
    %cst_20 = arith.constant dense<0.000000e+00> : vector<2x128xf32>
    %29 = tpu.matmul %23, %0, %cst_20 {dimension_numbers = #tpu.dot_dimension_numbers<[1], [0], [0], [1], [0, 0, 1, 1], [], []>} : vector<2x32xf32>, vector<32x128xf32>, vector<2x128xf32> -> vector<2x128xf32>
    %30 = arith.addf %28, %29 : vector<2x128xf32>
    %31 = arith.negf %30 : vector<2x128xf32>
    %32 = math.exp %31 : vector<2x128xf32>
    %cst_21 = arith.constant 1.000000e+00 : f32
    %33 = vector.broadcast %cst_21 : f32 to vector<2x128xf32>
    %34 = arith.addf %33, %32 : vector<2x128xf32>
    %35 = arith.divf %33, %34 : vector<2x128xf32>
    %cst_22 = arith.constant 2.000000e+00 : f32
    %36 = vector.broadcast %cst_22 : f32 to vector<2x128xf32>
    %37 = arith.mulf %36, %35 : vector<2x128xf32>
    %cst_23 = arith.constant 1.000000e+00 : f32
    %38 = vector.broadcast %cst_23 : f32 to vector<2x128xf32>
    %39 = arith.subf %37, %38 : vector<2x128xf32>
    %40 = arith.select %22, %39, %35 : vector<2x128xi1>, vector<2x128xf32>
    %41 = vector.extract_strided_slice %40 {offsets = [0, 0], sizes = [2, 32], strides = [1, 1]} : vector<2x128xf32> to vector<2x32xf32>
    %42 = vector.extract_strided_slice %40 {offsets = [0, 32], sizes = [2, 32], strides = [1, 1]} : vector<2x128xf32> to vector<2x32xf32>
    %43 = vector.extract_strided_slice %40 {offsets = [0, 64], sizes = [2, 32], strides = [1, 1]} : vector<2x128xf32> to vector<2x32xf32>
    %44 = vector.extract_strided_slice %40 {offsets = [0, 96], sizes = [2, 32], strides = [1, 1]} : vector<2x128xf32> to vector<2x32xf32>
    %45 = arith.mulf %42, %25 : vector<2x32xf32>
    %46 = arith.mulf %41, %43 : vector<2x32xf32>
    %47 = arith.addf %45, %46 : vector<2x32xf32>
    %48 = math.tanh %47 : vector<2x32xf32>
    %49 = arith.mulf %44, %48 : vector<2x32xf32>
    %cst_24 = arith.constant dense<0.000000e+00> : vector<2x128xf32>
    %50 = tpu.matmul %49, %10, %cst_24 {dimension_numbers = #tpu.dot_dimension_numbers<[1], [0], [0], [1], [0, 0, 1, 1], [], []>} : vector<2x32xf32>, vector<32x128xf32>, vector<2x128xf32> -> vector<2x128xf32>
    %cst_25 = arith.constant dense<0.000000e+00> : vector<2x128xf32>
    %51 = tpu.matmul %24, %12, %cst_25 {dimension_numbers = #tpu.dot_dimension_numbers<[1], [0], [0], [1], [0, 0, 1, 1], [], []>} : vector<2x32xf32>, vector<32x128xf32>, vector<2x128xf32> -> vector<2x128xf32>
    %52 = arith.addf %50, %51 : vector<2x128xf32>
    %53 = arith.addf %52, %16 : vector<2x128xf32>
    %54 = arith.negf %53 : vector<2x128xf32>
    %55 = math.exp %54 : vector<2x128xf32>
    %cst_26 = arith.constant 1.000000e+00 : f32
    %56 = vector.broadcast %cst_26 : f32 to vector<2x128xf32>
    %57 = arith.addf %56, %55 : vector<2x128xf32>
    %58 = arith.divf %56, %57 : vector<2x128xf32>
    %cst_27 = arith.constant 2.000000e+00 : f32
    %59 = vector.broadcast %cst_27 : f32 to vector<2x128xf32>
    %60 = arith.mulf %59, %58 : vector<2x128xf32>
    %cst_28 = arith.constant 1.000000e+00 : f32
    %61 = vector.broadcast %cst_28 : f32 to vector<2x128xf32>
    %62 = arith.subf %60, %61 : vector<2x128xf32>
    %63 = arith.select %22, %62, %58 : vector<2x128xi1>, vector<2x128xf32>
    %64 = vector.extract_strided_slice %63 {offsets = [0, 0], sizes = [2, 32], strides = [1, 1]} : vector<2x128xf32> to vector<2x32xf32>
    %65 = vector.extract_strided_slice %63 {offsets = [0, 32], sizes = [2, 32], strides = [1, 1]} : vector<2x128xf32> to vector<2x32xf32>
    %66 = vector.extract_strided_slice %63 {offsets = [0, 64], sizes = [2, 32], strides = [1, 1]} : vector<2x128xf32> to vector<2x32xf32>
    %67 = vector.extract_strided_slice %63 {offsets = [0, 96], sizes = [2, 32], strides = [1, 1]} : vector<2x128xf32> to vector<2x32xf32>
    %68 = arith.mulf %65, %26 : vector<2x32xf32>
    %69 = arith.mulf %64, %66 : vector<2x32xf32>
    %70 = arith.addf %68, %69 : vector<2x32xf32>
    %71 = math.tanh %70 : vector<2x32xf32>
    %72 = arith.mulf %67, %71 : vector<2x32xf32>
    %73 = vector.extract_strided_slice %8 {offsets = [1, 0, 0], sizes = [1, 2, 128], strides = [1, 1, 1]} : vector<8x2x128xf32> to vector<1x2x128xf32>
    %74 = vector.shape_cast %73 : vector<1x2x128xf32> to vector<2x128xf32>
    %cst_29 = arith.constant dense<0.000000e+00> : vector<2x128xf32>
    %75 = tpu.matmul %49, %0, %cst_29 {dimension_numbers = #tpu.dot_dimension_numbers<[1], [0], [0], [1], [0, 0, 1, 1], [], []>} : vector<2x32xf32>, vector<32x128xf32>, vector<2x128xf32> -> vector<2x128xf32>
    %76 = arith.addf %74, %75 : vector<2x128xf32>
    %77 = arith.negf %76 : vector<2x128xf32>
    %78 = math.exp %77 : vector<2x128xf32>
    %cst_30 = arith.constant 1.000000e+00 : f32
    %79 = vector.broadcast %cst_30 : f32 to vector<2x128xf32>
    %80 = arith.addf %79, %78 : vector<2x128xf32>
    %81 = arith.divf %79, %80 : vector<2x128xf32>
    %cst_31 = arith.constant 2.000000e+00 : f32
    %82 = vector.broadcast %cst_31 : f32 to vector<2x128xf32>
    %83 = arith.mulf %82, %81 : vector<2x128xf32>
    %cst_32 = arith.constant 1.000000e+00 : f32
    %84 = vector.broadcast %cst_32 : f32 to vector<2x128xf32>
    %85 = arith.subf %83, %84 : vector<2x128xf32>
    %86 = arith.select %22, %85, %81 : vector<2x128xi1>, vector<2x128xf32>
    %87 = vector.extract_strided_slice %86 {offsets = [0, 0], sizes = [2, 32], strides = [1, 1]} : vector<2x128xf32> to vector<2x32xf32>
    %88 = vector.extract_strided_slice %86 {offsets = [0, 32], sizes = [2, 32], strides = [1, 1]} : vector<2x128xf32> to vector<2x32xf32>
    %89 = vector.extract_strided_slice %86 {offsets = [0, 64], sizes = [2, 32], strides = [1, 1]} : vector<2x128xf32> to vector<2x32xf32>
    %90 = vector.extract_strided_slice %86 {offsets = [0, 96], sizes = [2, 32], strides = [1, 1]} : vector<2x128xf32> to vector<2x32xf32>
    %91 = arith.mulf %88, %47 : vector<2x32xf32>
    %92 = arith.mulf %87, %89 : vector<2x32xf32>
    %93 = arith.addf %91, %92 : vector<2x32xf32>
    %94 = math.tanh %93 : vector<2x32xf32>
    %95 = arith.mulf %90, %94 : vector<2x32xf32>
    %cst_33 = arith.constant dense<0.000000e+00> : vector<2x128xf32>
    %96 = tpu.matmul %95, %10, %cst_33 {dimension_numbers = #tpu.dot_dimension_numbers<[1], [0], [0], [1], [0, 0, 1, 1], [], []>} : vector<2x32xf32>, vector<32x128xf32>, vector<2x128xf32> -> vector<2x128xf32>
    %cst_34 = arith.constant dense<0.000000e+00> : vector<2x128xf32>
    %97 = tpu.matmul %72, %12, %cst_34 {dimension_numbers = #tpu.dot_dimension_numbers<[1], [0], [0], [1], [0, 0, 1, 1], [], []>} : vector<2x32xf32>, vector<32x128xf32>, vector<2x128xf32> -> vector<2x128xf32>
    %98 = arith.addf %96, %97 : vector<2x128xf32>
    %99 = arith.addf %98, %16 : vector<2x128xf32>
    %100 = arith.negf %99 : vector<2x128xf32>
    %101 = math.exp %100 : vector<2x128xf32>
    %cst_35 = arith.constant 1.000000e+00 : f32
    %102 = vector.broadcast %cst_35 : f32 to vector<2x128xf32>
    %103 = arith.addf %102, %101 : vector<2x128xf32>
    %104 = arith.divf %102, %103 : vector<2x128xf32>
    %cst_36 = arith.constant 2.000000e+00 : f32
    %105 = vector.broadcast %cst_36 : f32 to vector<2x128xf32>
    %106 = arith.mulf %105, %104 : vector<2x128xf32>
    %cst_37 = arith.constant 1.000000e+00 : f32
    %107 = vector.broadcast %cst_37 : f32 to vector<2x128xf32>
    %108 = arith.subf %106, %107 : vector<2x128xf32>
    %109 = arith.select %22, %108, %104 : vector<2x128xi1>, vector<2x128xf32>
    %110 = vector.extract_strided_slice %109 {offsets = [0, 0], sizes = [2, 32], strides = [1, 1]} : vector<2x128xf32> to vector<2x32xf32>
    %111 = vector.extract_strided_slice %109 {offsets = [0, 32], sizes = [2, 32], strides = [1, 1]} : vector<2x128xf32> to vector<2x32xf32>
    %112 = vector.extract_strided_slice %109 {offsets = [0, 64], sizes = [2, 32], strides = [1, 1]} : vector<2x128xf32> to vector<2x32xf32>
    %113 = vector.extract_strided_slice %109 {offsets = [0, 96], sizes = [2, 32], strides = [1, 1]} : vector<2x128xf32> to vector<2x32xf32>
    %114 = arith.mulf %111, %70 : vector<2x32xf32>
    %115 = arith.mulf %110, %112 : vector<2x32xf32>
    %116 = arith.addf %114, %115 : vector<2x32xf32>
    %117 = math.tanh %116 : vector<2x32xf32>
    %118 = arith.mulf %113, %117 : vector<2x32xf32>
    %119 = vector.extract_strided_slice %8 {offsets = [2, 0, 0], sizes = [1, 2, 128], strides = [1, 1, 1]} : vector<8x2x128xf32> to vector<1x2x128xf32>
    %120 = vector.shape_cast %119 : vector<1x2x128xf32> to vector<2x128xf32>
    %cst_38 = arith.constant dense<0.000000e+00> : vector<2x128xf32>
    %121 = tpu.matmul %95, %0, %cst_38 {dimension_numbers = #tpu.dot_dimension_numbers<[1], [0], [0], [1], [0, 0, 1, 1], [], []>} : vector<2x32xf32>, vector<32x128xf32>, vector<2x128xf32> -> vector<2x128xf32>
    %122 = arith.addf %120, %121 : vector<2x128xf32>
    %123 = arith.negf %122 : vector<2x128xf32>
    %124 = math.exp %123 : vector<2x128xf32>
    %cst_39 = arith.constant 1.000000e+00 : f32
    %125 = vector.broadcast %cst_39 : f32 to vector<2x128xf32>
    %126 = arith.addf %125, %124 : vector<2x128xf32>
    %127 = arith.divf %125, %126 : vector<2x128xf32>
    %cst_40 = arith.constant 2.000000e+00 : f32
    %128 = vector.broadcast %cst_40 : f32 to vector<2x128xf32>
    %129 = arith.mulf %128, %127 : vector<2x128xf32>
    %cst_41 = arith.constant 1.000000e+00 : f32
    %130 = vector.broadcast %cst_41 : f32 to vector<2x128xf32>
    %131 = arith.subf %129, %130 : vector<2x128xf32>
    %132 = arith.select %22, %131, %127 : vector<2x128xi1>, vector<2x128xf32>
    %133 = vector.extract_strided_slice %132 {offsets = [0, 0], sizes = [2, 32], strides = [1, 1]} : vector<2x128xf32> to vector<2x32xf32>
    %134 = vector.extract_strided_slice %132 {offsets = [0, 32], sizes = [2, 32], strides = [1, 1]} : vector<2x128xf32> to vector<2x32xf32>
    %135 = vector.extract_strided_slice %132 {offsets = [0, 64], sizes = [2, 32], strides = [1, 1]} : vector<2x128xf32> to vector<2x32xf32>
    %136 = vector.extract_strided_slice %132 {offsets = [0, 96], sizes = [2, 32], strides = [1, 1]} : vector<2x128xf32> to vector<2x32xf32>
    %137 = arith.mulf %134, %93 : vector<2x32xf32>
    %138 = arith.mulf %133, %135 : vector<2x32xf32>
    %139 = arith.addf %137, %138 : vector<2x32xf32>
    %140 = math.tanh %139 : vector<2x32xf32>
    %141 = arith.mulf %136, %140 : vector<2x32xf32>
    %cst_42 = arith.constant dense<0.000000e+00> : vector<2x128xf32>
    %142 = tpu.matmul %141, %10, %cst_42 {dimension_numbers = #tpu.dot_dimension_numbers<[1], [0], [0], [1], [0, 0, 1, 1], [], []>} : vector<2x32xf32>, vector<32x128xf32>, vector<2x128xf32> -> vector<2x128xf32>
    %cst_43 = arith.constant dense<0.000000e+00> : vector<2x128xf32>
    %143 = tpu.matmul %118, %12, %cst_43 {dimension_numbers = #tpu.dot_dimension_numbers<[1], [0], [0], [1], [0, 0, 1, 1], [], []>} : vector<2x32xf32>, vector<32x128xf32>, vector<2x128xf32> -> vector<2x128xf32>
    %144 = arith.addf %142, %143 : vector<2x128xf32>
    %145 = arith.addf %144, %16 : vector<2x128xf32>
    %146 = arith.negf %145 : vector<2x128xf32>
    %147 = math.exp %146 : vector<2x128xf32>
    %cst_44 = arith.constant 1.000000e+00 : f32
    %148 = vector.broadcast %cst_44 : f32 to vector<2x128xf32>
    %149 = arith.addf %148, %147 : vector<2x128xf32>
    %150 = arith.divf %148, %149 : vector<2x128xf32>
    %cst_45 = arith.constant 2.000000e+00 : f32
    %151 = vector.broadcast %cst_45 : f32 to vector<2x128xf32>
    %152 = arith.mulf %151, %150 : vector<2x128xf32>
    %cst_46 = arith.constant 1.000000e+00 : f32
    %153 = vector.broadcast %cst_46 : f32 to vector<2x128xf32>
    %154 = arith.subf %152, %153 : vector<2x128xf32>
    %155 = arith.select %22, %154, %150 : vector<2x128xi1>, vector<2x128xf32>
    %156 = vector.extract_strided_slice %155 {offsets = [0, 0], sizes = [2, 32], strides = [1, 1]} : vector<2x128xf32> to vector<2x32xf32>
    %157 = vector.extract_strided_slice %155 {offsets = [0, 32], sizes = [2, 32], strides = [1, 1]} : vector<2x128xf32> to vector<2x32xf32>
    %158 = vector.extract_strided_slice %155 {offsets = [0, 64], sizes = [2, 32], strides = [1, 1]} : vector<2x128xf32> to vector<2x32xf32>
    %159 = vector.extract_strided_slice %155 {offsets = [0, 96], sizes = [2, 32], strides = [1, 1]} : vector<2x128xf32> to vector<2x32xf32>
    %160 = arith.mulf %157, %116 : vector<2x32xf32>
    %161 = arith.mulf %156, %158 : vector<2x32xf32>
    %162 = arith.addf %160, %161 : vector<2x32xf32>
    %163 = math.tanh %162 : vector<2x32xf32>
    %164 = arith.mulf %159, %163 : vector<2x32xf32>
    %165 = vector.extract_strided_slice %8 {offsets = [3, 0, 0], sizes = [1, 2, 128], strides = [1, 1, 1]} : vector<8x2x128xf32> to vector<1x2x128xf32>
    %166 = vector.shape_cast %165 : vector<1x2x128xf32> to vector<2x128xf32>
    %cst_47 = arith.constant dense<0.000000e+00> : vector<2x128xf32>
    %167 = tpu.matmul %141, %0, %cst_47 {dimension_numbers = #tpu.dot_dimension_numbers<[1], [0], [0], [1], [0, 0, 1, 1], [], []>} : vector<2x32xf32>, vector<32x128xf32>, vector<2x128xf32> -> vector<2x128xf32>
    %168 = arith.addf %166, %167 : vector<2x128xf32>
    %169 = arith.negf %168 : vector<2x128xf32>
    %170 = math.exp %169 : vector<2x128xf32>
    %cst_48 = arith.constant 1.000000e+00 : f32
    %171 = vector.broadcast %cst_48 : f32 to vector<2x128xf32>
    %172 = arith.addf %171, %170 : vector<2x128xf32>
    %173 = arith.divf %171, %172 : vector<2x128xf32>
    %cst_49 = arith.constant 2.000000e+00 : f32
    %174 = vector.broadcast %cst_49 : f32 to vector<2x128xf32>
    %175 = arith.mulf %174, %173 : vector<2x128xf32>
    %cst_50 = arith.constant 1.000000e+00 : f32
    %176 = vector.broadcast %cst_50 : f32 to vector<2x128xf32>
    %177 = arith.subf %175, %176 : vector<2x128xf32>
    %178 = arith.select %22, %177, %173 : vector<2x128xi1>, vector<2x128xf32>
    %179 = vector.extract_strided_slice %178 {offsets = [0, 0], sizes = [2, 32], strides = [1, 1]} : vector<2x128xf32> to vector<2x32xf32>
    %180 = vector.extract_strided_slice %178 {offsets = [0, 32], sizes = [2, 32], strides = [1, 1]} : vector<2x128xf32> to vector<2x32xf32>
    %181 = vector.extract_strided_slice %178 {offsets = [0, 64], sizes = [2, 32], strides = [1, 1]} : vector<2x128xf32> to vector<2x32xf32>
    %182 = vector.extract_strided_slice %178 {offsets = [0, 96], sizes = [2, 32], strides = [1, 1]} : vector<2x128xf32> to vector<2x32xf32>
    %183 = arith.mulf %180, %139 : vector<2x32xf32>
    %184 = arith.mulf %179, %181 : vector<2x32xf32>
    %185 = arith.addf %183, %184 : vector<2x32xf32>
    %186 = math.tanh %185 : vector<2x32xf32>
    %187 = arith.mulf %182, %186 : vector<2x32xf32>
    %cst_51 = arith.constant dense<0.000000e+00> : vector<2x128xf32>
    %188 = tpu.matmul %187, %10, %cst_51 {dimension_numbers = #tpu.dot_dimension_numbers<[1], [0], [0], [1], [0, 0, 1, 1], [], []>} : vector<2x32xf32>, vector<32x128xf32>, vector<2x128xf32> -> vector<2x128xf32>
    %cst_52 = arith.constant dense<0.000000e+00> : vector<2x128xf32>
    %189 = tpu.matmul %164, %12, %cst_52 {dimension_numbers = #tpu.dot_dimension_numbers<[1], [0], [0], [1], [0, 0, 1, 1], [], []>} : vector<2x32xf32>, vector<32x128xf32>, vector<2x128xf32> -> vector<2x128xf32>
    %190 = arith.addf %188, %189 : vector<2x128xf32>
    %191 = arith.addf %190, %16 : vector<2x128xf32>
    %192 = arith.negf %191 : vector<2x128xf32>
    %193 = math.exp %192 : vector<2x128xf32>
    %cst_53 = arith.constant 1.000000e+00 : f32
    %194 = vector.broadcast %cst_53 : f32 to vector<2x128xf32>
    %195 = arith.addf %194, %193 : vector<2x128xf32>
    %196 = arith.divf %194, %195 : vector<2x128xf32>
    %cst_54 = arith.constant 2.000000e+00 : f32
    %197 = vector.broadcast %cst_54 : f32 to vector<2x128xf32>
    %198 = arith.mulf %197, %196 : vector<2x128xf32>
    %cst_55 = arith.constant 1.000000e+00 : f32
    %199 = vector.broadcast %cst_55 : f32 to vector<2x128xf32>
    %200 = arith.subf %198, %199 : vector<2x128xf32>
    %201 = arith.select %22, %200, %196 : vector<2x128xi1>, vector<2x128xf32>
    %202 = vector.extract_strided_slice %201 {offsets = [0, 0], sizes = [2, 32], strides = [1, 1]} : vector<2x128xf32> to vector<2x32xf32>
    %203 = vector.extract_strided_slice %201 {offsets = [0, 32], sizes = [2, 32], strides = [1, 1]} : vector<2x128xf32> to vector<2x32xf32>
    %204 = vector.extract_strided_slice %201 {offsets = [0, 64], sizes = [2, 32], strides = [1, 1]} : vector<2x128xf32> to vector<2x32xf32>
    %205 = vector.extract_strided_slice %201 {offsets = [0, 96], sizes = [2, 32], strides = [1, 1]} : vector<2x128xf32> to vector<2x32xf32>
    %206 = arith.mulf %203, %162 : vector<2x32xf32>
    %207 = arith.mulf %202, %204 : vector<2x32xf32>
    %208 = arith.addf %206, %207 : vector<2x32xf32>
    %209 = math.tanh %208 : vector<2x32xf32>
    %210 = arith.mulf %205, %209 : vector<2x32xf32>
    %211 = vector.extract_strided_slice %8 {offsets = [4, 0, 0], sizes = [1, 2, 128], strides = [1, 1, 1]} : vector<8x2x128xf32> to vector<1x2x128xf32>
    %212 = vector.shape_cast %211 : vector<1x2x128xf32> to vector<2x128xf32>
    %cst_56 = arith.constant dense<0.000000e+00> : vector<2x128xf32>
    %213 = tpu.matmul %187, %0, %cst_56 {dimension_numbers = #tpu.dot_dimension_numbers<[1], [0], [0], [1], [0, 0, 1, 1], [], []>} : vector<2x32xf32>, vector<32x128xf32>, vector<2x128xf32> -> vector<2x128xf32>
    %214 = arith.addf %212, %213 : vector<2x128xf32>
    %215 = arith.negf %214 : vector<2x128xf32>
    %216 = math.exp %215 : vector<2x128xf32>
    %cst_57 = arith.constant 1.000000e+00 : f32
    %217 = vector.broadcast %cst_57 : f32 to vector<2x128xf32>
    %218 = arith.addf %217, %216 : vector<2x128xf32>
    %219 = arith.divf %217, %218 : vector<2x128xf32>
    %cst_58 = arith.constant 2.000000e+00 : f32
    %220 = vector.broadcast %cst_58 : f32 to vector<2x128xf32>
    %221 = arith.mulf %220, %219 : vector<2x128xf32>
    %cst_59 = arith.constant 1.000000e+00 : f32
    %222 = vector.broadcast %cst_59 : f32 to vector<2x128xf32>
    %223 = arith.subf %221, %222 : vector<2x128xf32>
    %224 = arith.select %22, %223, %219 : vector<2x128xi1>, vector<2x128xf32>
    %225 = vector.extract_strided_slice %224 {offsets = [0, 0], sizes = [2, 32], strides = [1, 1]} : vector<2x128xf32> to vector<2x32xf32>
    %226 = vector.extract_strided_slice %224 {offsets = [0, 32], sizes = [2, 32], strides = [1, 1]} : vector<2x128xf32> to vector<2x32xf32>
    %227 = vector.extract_strided_slice %224 {offsets = [0, 64], sizes = [2, 32], strides = [1, 1]} : vector<2x128xf32> to vector<2x32xf32>
    %228 = vector.extract_strided_slice %224 {offsets = [0, 96], sizes = [2, 32], strides = [1, 1]} : vector<2x128xf32> to vector<2x32xf32>
    %229 = arith.mulf %226, %185 : vector<2x32xf32>
    %230 = arith.mulf %225, %227 : vector<2x32xf32>
    %231 = arith.addf %229, %230 : vector<2x32xf32>
    %232 = math.tanh %231 : vector<2x32xf32>
    %233 = arith.mulf %228, %232 : vector<2x32xf32>
    %cst_60 = arith.constant dense<0.000000e+00> : vector<2x128xf32>
    %234 = tpu.matmul %233, %10, %cst_60 {dimension_numbers = #tpu.dot_dimension_numbers<[1], [0], [0], [1], [0, 0, 1, 1], [], []>} : vector<2x32xf32>, vector<32x128xf32>, vector<2x128xf32> -> vector<2x128xf32>
    %cst_61 = arith.constant dense<0.000000e+00> : vector<2x128xf32>
    %235 = tpu.matmul %210, %12, %cst_61 {dimension_numbers = #tpu.dot_dimension_numbers<[1], [0], [0], [1], [0, 0, 1, 1], [], []>} : vector<2x32xf32>, vector<32x128xf32>, vector<2x128xf32> -> vector<2x128xf32>
    %236 = arith.addf %234, %235 : vector<2x128xf32>
    %237 = arith.addf %236, %16 : vector<2x128xf32>
    %238 = arith.negf %237 : vector<2x128xf32>
    %239 = math.exp %238 : vector<2x128xf32>
    %cst_62 = arith.constant 1.000000e+00 : f32
    %240 = vector.broadcast %cst_62 : f32 to vector<2x128xf32>
    %241 = arith.addf %240, %239 : vector<2x128xf32>
    %242 = arith.divf %240, %241 : vector<2x128xf32>
    %cst_63 = arith.constant 2.000000e+00 : f32
    %243 = vector.broadcast %cst_63 : f32 to vector<2x128xf32>
    %244 = arith.mulf %243, %242 : vector<2x128xf32>
    %cst_64 = arith.constant 1.000000e+00 : f32
    %245 = vector.broadcast %cst_64 : f32 to vector<2x128xf32>
    %246 = arith.subf %244, %245 : vector<2x128xf32>
    %247 = arith.select %22, %246, %242 : vector<2x128xi1>, vector<2x128xf32>
    %248 = vector.extract_strided_slice %247 {offsets = [0, 0], sizes = [2, 32], strides = [1, 1]} : vector<2x128xf32> to vector<2x32xf32>
    %249 = vector.extract_strided_slice %247 {offsets = [0, 32], sizes = [2, 32], strides = [1, 1]} : vector<2x128xf32> to vector<2x32xf32>
    %250 = vector.extract_strided_slice %247 {offsets = [0, 64], sizes = [2, 32], strides = [1, 1]} : vector<2x128xf32> to vector<2x32xf32>
    %251 = vector.extract_strided_slice %247 {offsets = [0, 96], sizes = [2, 32], strides = [1, 1]} : vector<2x128xf32> to vector<2x32xf32>
    %252 = arith.mulf %249, %208 : vector<2x32xf32>
    %253 = arith.mulf %248, %250 : vector<2x32xf32>
    %254 = arith.addf %252, %253 : vector<2x32xf32>
    %255 = math.tanh %254 : vector<2x32xf32>
    %256 = arith.mulf %251, %255 : vector<2x32xf32>
    %257 = vector.extract_strided_slice %8 {offsets = [5, 0, 0], sizes = [1, 2, 128], strides = [1, 1, 1]} : vector<8x2x128xf32> to vector<1x2x128xf32>
    %258 = vector.shape_cast %257 : vector<1x2x128xf32> to vector<2x128xf32>
    %cst_65 = arith.constant dense<0.000000e+00> : vector<2x128xf32>
    %259 = tpu.matmul %233, %0, %cst_65 {dimension_numbers = #tpu.dot_dimension_numbers<[1], [0], [0], [1], [0, 0, 1, 1], [], []>} : vector<2x32xf32>, vector<32x128xf32>, vector<2x128xf32> -> vector<2x128xf32>
    %260 = arith.addf %258, %259 : vector<2x128xf32>
    %261 = arith.negf %260 : vector<2x128xf32>
    %262 = math.exp %261 : vector<2x128xf32>
    %cst_66 = arith.constant 1.000000e+00 : f32
    %263 = vector.broadcast %cst_66 : f32 to vector<2x128xf32>
    %264 = arith.addf %263, %262 : vector<2x128xf32>
    %265 = arith.divf %263, %264 : vector<2x128xf32>
    %cst_67 = arith.constant 2.000000e+00 : f32
    %266 = vector.broadcast %cst_67 : f32 to vector<2x128xf32>
    %267 = arith.mulf %266, %265 : vector<2x128xf32>
    %cst_68 = arith.constant 1.000000e+00 : f32
    %268 = vector.broadcast %cst_68 : f32 to vector<2x128xf32>
    %269 = arith.subf %267, %268 : vector<2x128xf32>
    %270 = arith.select %22, %269, %265 : vector<2x128xi1>, vector<2x128xf32>
    %271 = vector.extract_strided_slice %270 {offsets = [0, 0], sizes = [2, 32], strides = [1, 1]} : vector<2x128xf32> to vector<2x32xf32>
    %272 = vector.extract_strided_slice %270 {offsets = [0, 32], sizes = [2, 32], strides = [1, 1]} : vector<2x128xf32> to vector<2x32xf32>
    %273 = vector.extract_strided_slice %270 {offsets = [0, 64], sizes = [2, 32], strides = [1, 1]} : vector<2x128xf32> to vector<2x32xf32>
    %274 = vector.extract_strided_slice %270 {offsets = [0, 96], sizes = [2, 32], strides = [1, 1]} : vector<2x128xf32> to vector<2x32xf32>
    %275 = arith.mulf %272, %231 : vector<2x32xf32>
    %276 = arith.mulf %271, %273 : vector<2x32xf32>
    %277 = arith.addf %275, %276 : vector<2x32xf32>
    %278 = math.tanh %277 : vector<2x32xf32>
    %279 = arith.mulf %274, %278 : vector<2x32xf32>
    %cst_69 = arith.constant dense<0.000000e+00> : vector<2x128xf32>
    %280 = tpu.matmul %279, %10, %cst_69 {dimension_numbers = #tpu.dot_dimension_numbers<[1], [0], [0], [1], [0, 0, 1, 1], [], []>} : vector<2x32xf32>, vector<32x128xf32>, vector<2x128xf32> -> vector<2x128xf32>
    %cst_70 = arith.constant dense<0.000000e+00> : vector<2x128xf32>
    %281 = tpu.matmul %256, %12, %cst_70 {dimension_numbers = #tpu.dot_dimension_numbers<[1], [0], [0], [1], [0, 0, 1, 1], [], []>} : vector<2x32xf32>, vector<32x128xf32>, vector<2x128xf32> -> vector<2x128xf32>
    %282 = arith.addf %280, %281 : vector<2x128xf32>
    %283 = arith.addf %282, %16 : vector<2x128xf32>
    %284 = arith.negf %283 : vector<2x128xf32>
    %285 = math.exp %284 : vector<2x128xf32>
    %cst_71 = arith.constant 1.000000e+00 : f32
    %286 = vector.broadcast %cst_71 : f32 to vector<2x128xf32>
    %287 = arith.addf %286, %285 : vector<2x128xf32>
    %288 = arith.divf %286, %287 : vector<2x128xf32>
    %cst_72 = arith.constant 2.000000e+00 : f32
    %289 = vector.broadcast %cst_72 : f32 to vector<2x128xf32>
    %290 = arith.mulf %289, %288 : vector<2x128xf32>
    %cst_73 = arith.constant 1.000000e+00 : f32
    %291 = vector.broadcast %cst_73 : f32 to vector<2x128xf32>
    %292 = arith.subf %290, %291 : vector<2x128xf32>
    %293 = arith.select %22, %292, %288 : vector<2x128xi1>, vector<2x128xf32>
    %294 = vector.extract_strided_slice %293 {offsets = [0, 0], sizes = [2, 32], strides = [1, 1]} : vector<2x128xf32> to vector<2x32xf32>
    %295 = vector.extract_strided_slice %293 {offsets = [0, 32], sizes = [2, 32], strides = [1, 1]} : vector<2x128xf32> to vector<2x32xf32>
    %296 = vector.extract_strided_slice %293 {offsets = [0, 64], sizes = [2, 32], strides = [1, 1]} : vector<2x128xf32> to vector<2x32xf32>
    %297 = vector.extract_strided_slice %293 {offsets = [0, 96], sizes = [2, 32], strides = [1, 1]} : vector<2x128xf32> to vector<2x32xf32>
    %298 = arith.mulf %295, %254 : vector<2x32xf32>
    %299 = arith.mulf %294, %296 : vector<2x32xf32>
    %300 = arith.addf %298, %299 : vector<2x32xf32>
    %301 = math.tanh %300 : vector<2x32xf32>
    %302 = arith.mulf %297, %301 : vector<2x32xf32>
    %303 = vector.extract_strided_slice %8 {offsets = [6, 0, 0], sizes = [1, 2, 128], strides = [1, 1, 1]} : vector<8x2x128xf32> to vector<1x2x128xf32>
    %304 = vector.shape_cast %303 : vector<1x2x128xf32> to vector<2x128xf32>
    %cst_74 = arith.constant dense<0.000000e+00> : vector<2x128xf32>
    %305 = tpu.matmul %279, %0, %cst_74 {dimension_numbers = #tpu.dot_dimension_numbers<[1], [0], [0], [1], [0, 0, 1, 1], [], []>} : vector<2x32xf32>, vector<32x128xf32>, vector<2x128xf32> -> vector<2x128xf32>
    %306 = arith.addf %304, %305 : vector<2x128xf32>
    %307 = arith.negf %306 : vector<2x128xf32>
    %308 = math.exp %307 : vector<2x128xf32>
    %cst_75 = arith.constant 1.000000e+00 : f32
    %309 = vector.broadcast %cst_75 : f32 to vector<2x128xf32>
    %310 = arith.addf %309, %308 : vector<2x128xf32>
    %311 = arith.divf %309, %310 : vector<2x128xf32>
    %cst_76 = arith.constant 2.000000e+00 : f32
    %312 = vector.broadcast %cst_76 : f32 to vector<2x128xf32>
    %313 = arith.mulf %312, %311 : vector<2x128xf32>
    %cst_77 = arith.constant 1.000000e+00 : f32
    %314 = vector.broadcast %cst_77 : f32 to vector<2x128xf32>
    %315 = arith.subf %313, %314 : vector<2x128xf32>
    %316 = arith.select %22, %315, %311 : vector<2x128xi1>, vector<2x128xf32>
    %317 = vector.extract_strided_slice %316 {offsets = [0, 0], sizes = [2, 32], strides = [1, 1]} : vector<2x128xf32> to vector<2x32xf32>
    %318 = vector.extract_strided_slice %316 {offsets = [0, 32], sizes = [2, 32], strides = [1, 1]} : vector<2x128xf32> to vector<2x32xf32>
    %319 = vector.extract_strided_slice %316 {offsets = [0, 64], sizes = [2, 32], strides = [1, 1]} : vector<2x128xf32> to vector<2x32xf32>
    %320 = vector.extract_strided_slice %316 {offsets = [0, 96], sizes = [2, 32], strides = [1, 1]} : vector<2x128xf32> to vector<2x32xf32>
    %321 = arith.mulf %318, %277 : vector<2x32xf32>
    %322 = arith.mulf %317, %319 : vector<2x32xf32>
    %323 = arith.addf %321, %322 : vector<2x32xf32>
    %324 = math.tanh %323 : vector<2x32xf32>
    %325 = arith.mulf %320, %324 : vector<2x32xf32>
    %cst_78 = arith.constant dense<0.000000e+00> : vector<2x128xf32>
    %326 = tpu.matmul %325, %10, %cst_78 {dimension_numbers = #tpu.dot_dimension_numbers<[1], [0], [0], [1], [0, 0, 1, 1], [], []>} : vector<2x32xf32>, vector<32x128xf32>, vector<2x128xf32> -> vector<2x128xf32>
    %cst_79 = arith.constant dense<0.000000e+00> : vector<2x128xf32>
    %327 = tpu.matmul %302, %12, %cst_79 {dimension_numbers = #tpu.dot_dimension_numbers<[1], [0], [0], [1], [0, 0, 1, 1], [], []>} : vector<2x32xf32>, vector<32x128xf32>, vector<2x128xf32> -> vector<2x128xf32>
    %328 = arith.addf %326, %327 : vector<2x128xf32>
    %329 = arith.addf %328, %16 : vector<2x128xf32>
    %330 = arith.negf %329 : vector<2x128xf32>
    %331 = math.exp %330 : vector<2x128xf32>
    %cst_80 = arith.constant 1.000000e+00 : f32
    %332 = vector.broadcast %cst_80 : f32 to vector<2x128xf32>
    %333 = arith.addf %332, %331 : vector<2x128xf32>
    %334 = arith.divf %332, %333 : vector<2x128xf32>
    %cst_81 = arith.constant 2.000000e+00 : f32
    %335 = vector.broadcast %cst_81 : f32 to vector<2x128xf32>
    %336 = arith.mulf %335, %334 : vector<2x128xf32>
    %cst_82 = arith.constant 1.000000e+00 : f32
    %337 = vector.broadcast %cst_82 : f32 to vector<2x128xf32>
    %338 = arith.subf %336, %337 : vector<2x128xf32>
    %339 = arith.select %22, %338, %334 : vector<2x128xi1>, vector<2x128xf32>
    %340 = vector.extract_strided_slice %339 {offsets = [0, 0], sizes = [2, 32], strides = [1, 1]} : vector<2x128xf32> to vector<2x32xf32>
    %341 = vector.extract_strided_slice %339 {offsets = [0, 32], sizes = [2, 32], strides = [1, 1]} : vector<2x128xf32> to vector<2x32xf32>
    %342 = vector.extract_strided_slice %339 {offsets = [0, 64], sizes = [2, 32], strides = [1, 1]} : vector<2x128xf32> to vector<2x32xf32>
    %343 = vector.extract_strided_slice %339 {offsets = [0, 96], sizes = [2, 32], strides = [1, 1]} : vector<2x128xf32> to vector<2x32xf32>
    %344 = arith.mulf %341, %300 : vector<2x32xf32>
    %345 = arith.mulf %340, %342 : vector<2x32xf32>
    %346 = arith.addf %344, %345 : vector<2x32xf32>
    %347 = math.tanh %346 : vector<2x32xf32>
    %348 = arith.mulf %343, %347 : vector<2x32xf32>
    %349 = vector.extract_strided_slice %8 {offsets = [7, 0, 0], sizes = [1, 2, 128], strides = [1, 1, 1]} : vector<8x2x128xf32> to vector<1x2x128xf32>
    %350 = vector.shape_cast %349 : vector<1x2x128xf32> to vector<2x128xf32>
    %cst_83 = arith.constant dense<0.000000e+00> : vector<2x128xf32>
    %351 = tpu.matmul %325, %0, %cst_83 {dimension_numbers = #tpu.dot_dimension_numbers<[1], [0], [0], [1], [0, 0, 1, 1], [], []>} : vector<2x32xf32>, vector<32x128xf32>, vector<2x128xf32> -> vector<2x128xf32>
    %352 = arith.addf %350, %351 : vector<2x128xf32>
    %353 = arith.negf %352 : vector<2x128xf32>
    %354 = math.exp %353 : vector<2x128xf32>
    %cst_84 = arith.constant 1.000000e+00 : f32
    %355 = vector.broadcast %cst_84 : f32 to vector<2x128xf32>
    %356 = arith.addf %355, %354 : vector<2x128xf32>
    %357 = arith.divf %355, %356 : vector<2x128xf32>
    %cst_85 = arith.constant 2.000000e+00 : f32
    %358 = vector.broadcast %cst_85 : f32 to vector<2x128xf32>
    %359 = arith.mulf %358, %357 : vector<2x128xf32>
    %cst_86 = arith.constant 1.000000e+00 : f32
    %360 = vector.broadcast %cst_86 : f32 to vector<2x128xf32>
    %361 = arith.subf %359, %360 : vector<2x128xf32>
    %362 = arith.select %22, %361, %357 : vector<2x128xi1>, vector<2x128xf32>
    %363 = vector.extract_strided_slice %362 {offsets = [0, 0], sizes = [2, 32], strides = [1, 1]} : vector<2x128xf32> to vector<2x32xf32>
    %364 = vector.extract_strided_slice %362 {offsets = [0, 32], sizes = [2, 32], strides = [1, 1]} : vector<2x128xf32> to vector<2x32xf32>
    %365 = vector.extract_strided_slice %362 {offsets = [0, 64], sizes = [2, 32], strides = [1, 1]} : vector<2x128xf32> to vector<2x32xf32>
    %366 = vector.extract_strided_slice %362 {offsets = [0, 96], sizes = [2, 32], strides = [1, 1]} : vector<2x128xf32> to vector<2x32xf32>
    %367 = arith.mulf %364, %323 : vector<2x32xf32>
    %368 = arith.mulf %363, %365 : vector<2x32xf32>
    %369 = arith.addf %367, %368 : vector<2x32xf32>
    %370 = math.tanh %369 : vector<2x32xf32>
    %371 = arith.mulf %366, %370 : vector<2x32xf32>
    %cst_87 = arith.constant dense<0.000000e+00> : vector<2x128xf32>
    %372 = tpu.matmul %371, %10, %cst_87 {dimension_numbers = #tpu.dot_dimension_numbers<[1], [0], [0], [1], [0, 0, 1, 1], [], []>} : vector<2x32xf32>, vector<32x128xf32>, vector<2x128xf32> -> vector<2x128xf32>
    %cst_88 = arith.constant dense<0.000000e+00> : vector<2x128xf32>
    %373 = tpu.matmul %348, %12, %cst_88 {dimension_numbers = #tpu.dot_dimension_numbers<[1], [0], [0], [1], [0, 0, 1, 1], [], []>} : vector<2x32xf32>, vector<32x128xf32>, vector<2x128xf32> -> vector<2x128xf32>
    %374 = arith.addf %372, %373 : vector<2x128xf32>
    %375 = arith.addf %374, %16 : vector<2x128xf32>
    %376 = arith.negf %375 : vector<2x128xf32>
    %377 = math.exp %376 : vector<2x128xf32>
    %cst_89 = arith.constant 1.000000e+00 : f32
    %378 = vector.broadcast %cst_89 : f32 to vector<2x128xf32>
    %379 = arith.addf %378, %377 : vector<2x128xf32>
    %380 = arith.divf %378, %379 : vector<2x128xf32>
    %cst_90 = arith.constant 2.000000e+00 : f32
    %381 = vector.broadcast %cst_90 : f32 to vector<2x128xf32>
    %382 = arith.mulf %381, %380 : vector<2x128xf32>
    %cst_91 = arith.constant 1.000000e+00 : f32
    %383 = vector.broadcast %cst_91 : f32 to vector<2x128xf32>
    %384 = arith.subf %382, %383 : vector<2x128xf32>
    %385 = arith.select %22, %384, %380 : vector<2x128xi1>, vector<2x128xf32>
    %386 = vector.extract_strided_slice %385 {offsets = [0, 0], sizes = [2, 32], strides = [1, 1]} : vector<2x128xf32> to vector<2x32xf32>
    %387 = vector.extract_strided_slice %385 {offsets = [0, 32], sizes = [2, 32], strides = [1, 1]} : vector<2x128xf32> to vector<2x32xf32>
    %388 = vector.extract_strided_slice %385 {offsets = [0, 64], sizes = [2, 32], strides = [1, 1]} : vector<2x128xf32> to vector<2x32xf32>
    %389 = vector.extract_strided_slice %385 {offsets = [0, 96], sizes = [2, 32], strides = [1, 1]} : vector<2x128xf32> to vector<2x32xf32>
    %390 = arith.mulf %387, %346 : vector<2x32xf32>
    %391 = arith.mulf %386, %388 : vector<2x32xf32>
    %392 = arith.addf %390, %391 : vector<2x32xf32>
    %393 = math.tanh %392 : vector<2x32xf32>
    %394 = arith.mulf %389, %393 : vector<2x32xf32>
    %395 = tpu.concatenate %72, %118, %164, %210, %256, %302, %348, %394 in 0 : vector<2x32xf32>, vector<2x32xf32>, vector<2x32xf32>, vector<2x32xf32>, vector<2x32xf32>, vector<2x32xf32>, vector<2x32xf32>, vector<2x32xf32> -> vector<16x32xf32>
    %c0_92 = arith.constant 0 : index
    %c0_93 = arith.constant 0 : index
    %396 = vector.load %arg6[%c0_92, %c0_93] : memref<32x4xf32, #tpu.memory_space<vmem>>, vector<32x4xf32>
    %cst_94 = arith.constant dense<0.000000e+00> : vector<16x4xf32>
    %397 = tpu.matmul %395, %396, %cst_94 {dimension_numbers = #tpu.dot_dimension_numbers<[1], [0], [0], [1], [0, 0, 1, 1], [], []>} : vector<16x32xf32>, vector<32x4xf32>, vector<16x4xf32> -> vector<16x4xf32>
    %c0_95 = arith.constant 0 : index
    %c0_96 = arith.constant 0 : index
    %398 = vector.load %arg7[%c0_95, %c0_96] : memref<1x4xf32, #tpu.memory_space<vmem>>, vector<1x4xf32>
    %399 = vector.broadcast %398 : vector<1x4xf32> to vector<16x4xf32>
    %400 = arith.addf %397, %399 : vector<16x4xf32>
    %c0_97 = arith.constant 0 : index
    %c0_98 = arith.constant 0 : index
    %401 = vector.load %arg8[%c0_97, %c0_98] : memref<16x4xf32, #tpu.memory_space<vmem>>, vector<16x4xf32>
    tpu.vector_store %arg8[%c0_97, %c0_98], %400 {strides = array<i32>} : memref<16x4xf32, #tpu.memory_space<vmem>>, vector<16x4xf32>,
    return
  }
}

</mosaic_0001>

<bundles_post_ra>
// kernel: model_forward.1
= control target key start
LH: loop header
LB: loop body
LE: loop exit
PB: predicated region body
PF: predicated region fallthrough
CT: control target
= control target key end

     0   :  { %vm47_vm0 = vcmask 1043456   ;;  %vm40_vm1 = vcmask 31744   ;;  %v1536_v6 = vmov 0.0   ;;  %v101_v17 = vlaneseq  ;;  %s1537_s17 = smov 64   ;;  %s1538_s18 = smov 32   ;;  %s2021_s2 = inlined_call_operand.vmem [shape: f32[32,128], index: 2, kind: input, shape index: {}]   ;;  %s2022_s1 = inlined_call_operand.vmem [shape: f32[4,128], index: 1, kind: input, shape index: {}]   ;;  %s2023_s0 = inlined_call_operand.vmem [shape: f32[16,4], index: 0, kind: input, shape index: {}]   ;;  %s2024_s5 = inlined_call_operand.vmem [shape: f32[2,1,128], index: 5, kind: input, shape index: {}]   ;;  %s2025_s4 = inlined_call_operand.vmem [shape: f32[1,32,128], index: 4, kind: input, shape index: {}]   ;;  %s2026_s3 = inlined_call_operand.vmem [shape: f32[1,32,128], index: 3, kind: input, shape index: {}]   ;;  %s2027_s6 = inlined_call_operand.vmem [shape: f32[32,4], index: 6, kind: input, shape index: {}]   ;;  %s2028_s7 = inlined_call_operand.vmem [shape: f32[1,4], index: 7, kind: input, shape index: {}]   ;;  %s2029_s8 = inlined_call_operand.vmem [shape: f32[16,4], index: 8, kind: output, shape index: {}]  }
   0x1   :  { %v1587_v0 = vld [vmem:[%s2021_s2 + $0x18] sm:$0xff]  ;;  %v1592_v1 = vld [vmem:[%s2021_s2 + $0x10] sm:$0xff]  ;;  %v35_v2 = vld [vmem:[%s2022_s1] sm:$0xf]  ;;  %vm106_vm9 = vcmask 261120  }
   0x2   :  { %122 = vmatpush.msra.mxu1 %v1587_v0  ;;  %1373 = vmatpush.msk.msra.mxu0 %vm47_vm0, %v35_v2  ;;  %v33_v3 = vld [vmem:[%s2023_s0] sm:$0xff]  ;;  %v1605_v4 = vld [vmem:[%s2021_s2 + $0x8] sm:$0xff]  ;;  %v102_v20 = vand.u32 127, %v101_v17  ;;  %v1649_v37 = vld [vmem:[%s2025_s4 + $0x18] sm:$0xff] }
   0x3   :  { %1374 = vmatmul.msk.f32.vlgmr.msra.gmra.mxu0 %vm40_vm1, %v33_v3  ;;  %v1613_v5 = vld [vmem:[%s2021_s2] sm:$0xff]  ;;  %v1654_v38 = vld [vmem:[%s2025_s4 + $0x10] sm:$0xff]  ;;  %182 = vmatpush.msra.mxu3 %v1649_v37  ;;  %v1661_v39 = vld [vmem:[%s2025_s4 + $0x8] sm:$0xff] }
   0x4   :  { %123 = vmatpush.msra.mxu1 %v1592_v1  ;;  %417 = vmatpush.msrb.mxu0 %v1587_v0  ;;  %v1628_v7 = vld [vmem:[%s2024_s5] ss:$0 sm:$0xff]  ;;  %vm103_vm5 = vcmp.ge.s32.totalorder %v102_v20, 64  ;;  %vm104_vm6 = vcmp.lt.s32.totalorder %v102_v20, 96  ;;  %v1679_v41 = vld [vmem:[%s2026_s3 + $0x18] sm:$0xff]  ;;  %v1689_v42 = vld [vmem:[%s2026_s3 + $0x10] sm:$0xff] }
   0x5   :  { %vm1634_vm8 = vmand %vm103_vm5, %vm104_vm6  ;;  %332 = vmatpush.msra.mxu2 %v1649_v37  ;;  %183 = vmatpush.msra.mxu3 %v1654_v38  ;;  %v1670_v40 = vld [vmem:[%s2025_s4] sm:$0xff]  ;;  %v1697_v43 = vld [vmem:[%s2026_s3 + $0x8] sm:$0xff] }
   0x6   :  { %124 = vmatpush.msra.mxu1 %v1605_v4  ;;  %418 = vmatpush.msrb.mxu0 %v1592_v1  ;;  %v1705_v44 = vld [vmem:[%s2026_s3] sm:$0xff] }
   0x7   :  { %333 = vmatpush.msra.mxu2 %v1654_v38  ;;  %184 = vmatpush.msra.mxu3 %v1661_v39  ;;  %v1730_v53 = vld [vmem:[%s2024_s5 + $0x1] ss:$0 sm:$0xff] }
   0x8   :  { %125 = vmatpush.msra.mxu1 %v1613_v5  ;;  %419 = vmatpush.msrb.mxu0 %v1605_v4  ;;  %v1326_v28 = vld [vmem:[%s2027_s6] sm:$0xff] }
   0x9   :  { %126 = vmatmul.f32.vlgmr.msra.gmra.mxu1 %v1536_v6  ;;  %334 = vmatpush.msra.mxu2 %v1661_v39 }
   0xa   :  { %267 = vmatpush.msrb.mxu1 %v1587_v0  ;;  %420 = vmatpush.msrb.mxu0 %v1613_v5 }
   0xb   :  { %185 = vmatpush.msra.mxu3 %v1670_v40  ;;  %335 = vmatpush.msra.mxu2 %v1670_v40 }
   0xc   :  { %268 = vmatpush.msrb.mxu1 %v1592_v1  ;;  %632 = vmatpush.msra.mxu0 %v1649_v37 }
   0xd   :  { %186 = vmatmul.f32.vlgmr.msra.gmra.mxu3 %v1536_v6  ;;  %507 = vmatpush.msrb.mxu2 %v1679_v41 }
   0xe   :  { %269 = vmatpush.msrb.mxu1 %v1605_v4  ;;  %633 = vmatpush.msra.mxu0 %v1654_v38 }
   0xf   :  { %207 = vmatpush.msrb.mxu3 %v1679_v41  ;;  %508 = vmatpush.msrb.mxu2 %v1689_v42 }
  0x10   :  { %270 = vmatpush.msrb.mxu1 %v1613_v5  ;;  %634 = vmatpush.msra.mxu0 %v1661_v39 }
  0x11   :  { %208 = vmatpush.msrb.mxu3 %v1689_v42  ;;  %509 = vmatpush.msrb.mxu2 %v1697_v43 }
  0x12   :  { %482 = vmatpush.msra.mxu1 %v1649_v37  ;;  %635 = vmatpush.msra.mxu0 %v1670_v40 }
  0x13   :  { %209 = vmatpush.msrb.mxu3 %v1697_v43  ;;  %510 = vmatpush.msrb.mxu2 %v1705_v44 }
  0x14   :  { %483 = vmatpush.msra.mxu1 %v1654_v38 }
  0x15   :  { %210 = vmatpush.msrb.mxu3 %v1705_v44 }
  0x16   :  { %484 = vmatpush.msra.mxu1 %v1661_v39 }
  0x17   :  { %357 = vmatpush.msra.mxu3 %v1679_v41 }
  0x18   :  { %485 = vmatpush.msra.mxu1 %v1670_v40 }
  0x19   :  { %358 = vmatpush.msra.mxu3 %v1689_v42 }
  0x1b   :  { %359 = vmatpush.msra.mxu3 %v1697_v43 }
  0x1d   :  { %360 = vmatpush.msra.mxu3 %v1705_v44 }
  0x80   :  { %v68_v8 = vpop.f32.mrf.mxu0 }
  0x81   :  { %v1631_v9 = vadd.f32 %v1628_v7, %v68_v8 }
  0x83   :  { %v76_v49 = vrot.slane %v1631_v9, 2 }
  0x86   :  { %v127_v10 = vpop.f32.mrf.mxu1 }
  0x87   :  { %v130_v11 = vadd.f32 %v127_v10, %v1631_v9 }
  0x89   :  { %v1377_v12 = vmul.f32 -1.442695, %v130_v11 }
  0x8b   :  { %1439 = vpow2.f32 %v1377_v12 }
  0x90   :  { %v187_v48 = vpop.f32.mrf.mxu3 }
  0x91   :  { %v1440_v13 = vpop.eup %1439 }
  0x92   :  { %v134_v14 = vadd.f32 1.0, %v1440_v13 }
  0x94   :  { %1441 = vrcp.f32 %v134_v14  ;;  %v146_v19 = vand.u32 2147483648, %v134_v14  ;;  %v144_v22 = vand.u32 2147483647, %v134_v14  ;;  %vm140_vm3 = vweird.f32 %v134_v14 }
  0x96   :  { %v147_v24 = vor.u32 1.1754944e-38, %v146_v19  ;;  %vm145_vm7 = vcmp.eq.f32.partialorder %v144_v22, 8.507059e+37 }
  0x9a   :  { %v1442_v15 = vpop.eup %1441 }
  0x9b   :  { %v136_v16 = vmul.f32 %v1442_v15, %v134_v14  ;;  %vm141_vm2 = vweird.f32 %v1442_v15 }
  0x9c   :  { %vm142_vm4 = vmor %vm140_vm3, %vm141_vm2 }
  0x9d   :  { %v137_v18 = vsub.f32 1.0, %v136_v16 }
  0x9f   :  { %v138_v21 = vmul.f32 %v1442_v15, %v137_v18 }
  0xa1   :  { %v139_v23 = vadd.f32 %v1442_v15, %v138_v21 }
  0xa3   :  { %v143_v25 = vsel %vm142_vm4, %v1442_v15, %v139_v23 }
  0xa4   :  { %v148_v26 = vsel %vm145_vm7, %v147_v24, %v143_v25 }
  0xa5   :  { %v150_v27 = vmul.f32 2.0, %v148_v26 }
  0xa7   :  { %v1378_v29 = vadd.f32 -1.0, %v150_v27 }
  0xa9   :  { %v152_v30 = vsel %vm1634_vm8, %v1378_v29, %v148_v26 }
  0xaa   :  { %155 = vrot.lane.b32.xlu0 %v152_v30, %s1537_s17  ;;  %v153_v33 = vmul.f32 0.0, %v152_v30 }
 0x11c   :  { %v156_v31 = vpop.permute.xlu0 %155 }
 0x11d   :  { %v158_v32 = vmul.f32 %v156_v31, %v152_v30 }
 0x11f   :  { %160 = vrot.lane.b32.xlu0 %v158_v32, %s1538_s18 }
 0x191   :  { %v161_v34 = vpop.permute.xlu0 %160 }
 0x192   :  { %v1642_v35 = vadd.f32 %v161_v34, %v153_v33 }
 0x194   :  { %1443 = vtanh.f32 %v1642_v35 }
 0x19a   :  { %v1444_v36 = vpop.eup %1443 }
 0x19b   :  { %166 = vrot.lane.b32.xlu1 %v1444_v36, %s1537_s17 }
 0x20d   :  { %v167_v45 = vpop.permute.xlu1 %166 }
 0x20e   :  { %v169_v46 = vmul.f32 %v167_v45, %v152_v30 }
 0x210   :  { %191 = vrot.lane.b32.xlu1 %v169_v46, %s1538_s18 }
 0x282   :  { %v192_v47 = vpop.permute.xlu1 %191 }
 0x283   :  { %1379 = vmatmul.msk.f32.vlgmr.msrb.gmra.mxu3 %vm106_vm9, %v192_v47  ;;  %1382 = vmatmul.msk.f32.vlgmr.msrb.gmra.mxu1 %vm106_vm9, %v192_v47 }
 0x284   :  { %567 = vmatpush.msrb.mxu3 %v1587_v0  ;;  %657 = vmatpush.msrb.mxu1 %v1679_v41 }
 0x286   :  { %568 = vmatpush.msrb.mxu3 %v1592_v1  ;;  %658 = vmatpush.msrb.mxu1 %v1689_v42 }
 0x288   :  { %569 = vmatpush.msrb.mxu3 %v1605_v4  ;;  %659 = vmatpush.msrb.mxu1 %v1697_v43 }
 0x28a   :  { %570 = vmatpush.msrb.mxu3 %v1613_v5  ;;  %660 = vmatpush.msrb.mxu1 %v1705_v44 }
 0x300   :  { %v272_v50 = vpop.f32.mrf.mxu1 }
 0x301   :  { %v275_v51 = vadd.f32 %v272_v50, %v76_v49 }
 0x303   :  { %v1383_v52 = vmul.f32 -1.442695, %v275_v51 }
 0x305   :  { %1445 = vpow2.f32 %v1383_v52 }
 0x306   :  { %v212_v54 = vpop.f32.mrf.mxu3 }
 0x307   :  { %v213_v55 = vadd.f32 %v212_v54, %v187_v48 }
 0x309   :  { %v215_v56 = vadd.f32 %v1730_v53, %v213_v55 }
 0x30b   :  { %v1446_v57 = vpop.eup %1445  ;;  %v1380_v58 = vmul.f32 -1.442695, %v215_v56 }
 0x30c   :  { %v279_v59 = vadd.f32 1.0, %v1446_v57 }
 0x30d   :  { %1447 = vpow2.f32 %v1380_v58 }
 0x30e   :  { %1449 = vrcp.f32 %v279_v59  ;;  %vm285_vm12 = vweird.f32 %v279_v59  ;;  %v291_v15 = vand.u32 2147483648, %v279_v59  ;;  %v289_v17 = vand.u32 2147483647, %v279_v59 }
 0x310   :  { %v292_v22 = vor.u32 1.1754944e-38, %v291_v15  ;;  %vm290_vm3 = vcmp.eq.f32.partialorder %v289_v17, 8.507059e+37 }
 0x313   :  { %v1448_v60 = vpop.eup %1447 }
 0x314   :  { %v1450_v61 = vpop.eup %1449  ;;  %v219_v62 = vadd.f32 1.0, %v1448_v60  ;;  %v77_v60 = vrot.slane %v1631_v9, 4 }
 0x315   :  { %v281_v63 = vmul.f32 %v1450_v61, %v279_v59  ;;  %vm286_vm10 = vweird.f32 %v1450_v61 }
 0x316   :  { %1451 = vrcp.f32 %v219_v62  ;;  %v231_v11 = vand.u32 2147483648, %v219_v62  ;;  %v229_v13 = vand.u32 2147483647, %v219_v62  ;;  %vm225_vm13 = vweird.f32 %v219_v62  ;;  %vm287_vm14 = vmor %vm285_vm12, %vm286_vm10 }
 0x317   :  { %v282_v2 = vsub.f32 1.0, %v281_v63 }
 0x318   :  { %v232_v18 = vor.u32 1.1754944e-38, %v231_v11  ;;  %vm230_vm2 = vcmp.eq.f32.partialorder %v229_v13, 8.507059e+37 }
 0x319   :  { %v283_v8 = vmul.f32 %v1450_v61, %v282_v2 }
 0x31b   :  { %v284_v14 = vadd.f32 %v1450_v61, %v283_v8 }
 0x31c   :  { %v1452_v3 = vpop.eup %1451 }
 0x31d   :  { %v221_v6 = vmul.f32 %v1452_v3, %v219_v62  ;;  %vm226_vm11 = vweird.f32 %v1452_v3  ;;  %v288_v20 = vsel %vm287_vm14, %v1450_v61, %v284_v14 }
 0x31e   :  { %vm227_vm15 = vmor %vm225_vm13, %vm226_vm11  ;;  %v293_v24 = vsel %vm290_vm3, %v292_v22, %v288_v20 }
 0x31f   :  { %v222_v10 = vsub.f32 1.0, %v221_v6  ;;  %v295_v27 = vmul.f32 2.0, %v293_v24 }
 0x321   :  { %v223_v12 = vmul.f32 %v1452_v3, %v222_v10  ;;  %v1384_v29 = vadd.f32 -1.0, %v295_v27 }
 0x323   :  { %v224_v16 = vadd.f32 %v1452_v3, %v223_v12  ;;  %v297_v30 = vsel %vm1634_vm8, %v1384_v29, %v293_v24 }
 0x324   :  { %v298_v47 = vmul.f32 %v297_v30, %v1642_v35  ;;  %v34_v35 = vld [vmem:[%s2023_s0 + $0x8] sm:$0xff] }
 0x325   :  { %v228_v19 = vsel %vm227_vm15, %v1452_v3, %v224_v16  ;;  %1375 = vmatmul.msk.f32.gmra.mxu0 %vm40_vm1, %v34_v35 }
 0x326   :  { %v233_v21 = vsel %vm230_vm2, %v232_v18, %v228_v19 }
 0x327   :  { %v235_v23 = vmul.f32 2.0, %v233_v21 }
 0x329   :  { %v1381_v25 = vadd.f32 -1.0, %v235_v23 }
 0x32b   :  { %v237_v26 = vsel %vm1634_vm8, %v1381_v25, %v233_v21 }
 0x32c   :  { %240 = vrot.lane.b32.xlu2 %v237_v26, %s1537_s17  ;;  %v238_v36 = vmul.f32 0.0, %v237_v26 }
 0x334   :  { %300 = vrot.lane.b32.xlu2 %v297_v30, %s1537_s17 }
 0x386   :  { %v241_v31 = vpop.permute.xlu2 %240 }
 0x387   :  { %v243_v32 = vmul.f32 %v241_v31, %v237_v26 }
 0x389   :  { %245 = vrot.lane.b32.xlu0 %v243_v32, %s1538_s18 }
 0x38e   :  { %v301_v33 = vpop.permute.xlu2 %300 }
 0x38f   :  { %v303_v34 = vmul.f32 %v301_v33, %v297_v30 }
 0x391   :  { %305 = vrot.lane.b32.xlu1 %v303_v34, %s1538_s18 }
 0x3a2   :  { %v1774_v59 = vpop.f32.mrf.mxu0 }
 0x3fb   :  { %v246_v45 = vpop.permute.xlu0 %245 }
 0x3fc   :  { %v1741_v46 = vadd.f32 %v246_v45, %v238_v36 }
 0x3fe   :  { %1453 = vtanh.f32 %v1741_v46 }
 0x403   :  { %v306_v48 = vpop.permute.xlu1 %305 }
 0x404   :  { %v1454_v49 = vpop.eup %1453  ;;  %v1745_v50 = vadd.f32 %v306_v48, %v298_v47 }
 0x405   :  { %251 = vrot.lane.b32.xlu2 %v1454_v49, %s1537_s17 }
 0x406   :  { %1455 = vtanh.f32 %v1745_v50 }
 0x40c   :  { %v1456_v51 = vpop.eup %1455 }
 0x40d   :  { %311 = vrot.lane.b32.xlu0 %v1456_v51, %s1537_s17 }
 0x45f   :  { %v252_v52 = vpop.permute.xlu2 %251 }
 0x460   :  { %v1750_v54 = vmul.f32 %v252_v52, %v237_v26 }
 0x462   :  { %316 = vrot.lane.b32.xlu1 %v1750_v54, %s1538_s18 }
 0x47f   :  { %v312_v55 = vpop.permute.xlu0 %311 }
 0x480   :  { %v314_v56 = vmul.f32 %v312_v55, %v297_v30 }
 0x482   :  { %341 = vrot.lane.b32.xlu2 %v314_v56, %s1538_s18 }
 0x4d4   :  { %v317_v57 = vpop.permute.xlu1 %316 }
 0x4d5   :  { %1385 = vmatmul.msk.f32.vlgmr.msra.gmra.mxu2 %vm106_vm9, %v317_v57 }
 0x4d6   :  { %717 = vmatpush.msra.mxu2 %v1587_v0 }
 0x4d8   :  { %718 = vmatpush.msra.mxu2 %v1592_v1 }
 0x4da   :  { %719 = vmatpush.msra.mxu2 %v1605_v4 }
 0x4dc   :  { %v342_v58 = vpop.permute.xlu2 %341  ;;  %720 = vmatpush.msra.mxu2 %v1613_v5 }
 0x4dd   :  { %1386 = vmatmul.msk.f32.vlgmr.msra.gmra.mxu3 %vm106_vm9, %v342_v58  ;;  %1389 = vmatmul.msk.f32.vlgmr.msrb.gmra.mxu0 %vm106_vm9, %v342_v58 }
 0x4de   :  { %807 = vmatpush.msrb.mxu0 %v1679_v41  ;;  %782 = vmatpush.msra.mxu3 %v1649_v37 }
 0x4e0   :  { %808 = vmatpush.msrb.mxu0 %v1689_v42  ;;  %783 = vmatpush.msra.mxu3 %v1654_v38 }
 0x4e2   :  { %809 = vmatpush.msrb.mxu0 %v1697_v43  ;;  %784 = vmatpush.msra.mxu3 %v1661_v39 }
 0x4e4   :  { %810 = vmatpush.msrb.mxu0 %v1705_v44  ;;  %785 = vmatpush.msra.mxu3 %v1670_v40 }
 0x558   :  { %v337_v2 = vpop.f32.mrf.mxu2 }
 0x55a   :  { %v422_v61 = vpop.f32.mrf.mxu0 }
 0x55b   :  { %v425_v62 = vadd.f32 %v422_v61, %v77_v60 }
 0x55d   :  { %v1390_v63 = vmul.f32 -1.442695, %v425_v62 }
 0x55f   :  { %1457 = vpow2.f32 %v1390_v63 }
 0x560   :  { %v362_v3 = vpop.f32.mrf.mxu3 }
 0x561   :  { %v363_v6 = vadd.f32 %v362_v3, %v337_v2 }
 0x563   :  { %v365_v8 = vadd.f32 %v1730_v53, %v363_v6 }
 0x565   :  { %v1458_v10 = vpop.eup %1457  ;;  %v1387_v11 = vmul.f32 -1.442695, %v365_v8 }
 0x566   :  { %v429_v12 = vadd.f32 1.0, %v1458_v10 }
 0x567   :  { %1459 = vpow2.f32 %v1387_v11 }
 0x568   :  { %1461 = vrcp.f32 %v429_v12  ;;  %v441_v18 = vand.u32 2147483648, %v429_v12  ;;  %v439_v20 = vand.u32 2147483647, %v429_v12  ;;  %vm435_vm5 = vweird.f32 %v429_v12 }
 0x56a   :  { %v442_v23 = vor.u32 1.1754944e-38, %v441_v18  ;;  %vm440_vm7 = vcmp.eq.f32.partialorder %v439_v20, 8.507059e+37 }
 0x56d   :  { %v1460_v13 = vpop.eup %1459 }
 0x56e   :  { %v1462_v14 = vpop.eup %1461  ;;  %v369_v15 = vadd.f32 1.0, %v1460_v13  ;;  %v78_v13 = vrot.slane %v1631_v9, 6 }
 0x56f   :  { %v431_v16 = vmul.f32 %v1462_v14, %v429_v12  ;;  %vm436_vm4 = vweird.f32 %v1462_v14 }
 0x570   :  { %1463 = vrcp.f32 %v369_v15  ;;  %vm437_vm6 = vmor %vm435_vm5, %vm436_vm4  ;;  %v381_v30 = vand.u32 2147483648, %v369_v15  ;;  %v379_v33 = vand.u32 2147483647, %v369_v15  ;;  %vm375_vm11 = vweird.f32 %v369_v15 }
 0x571   :  { %v432_v17 = vsub.f32 1.0, %v431_v16 }
 0x572   :  { %v382_v45 = vor.u32 1.1754944e-38, %v381_v30  ;;  %vm380_vm13 = vcmp.eq.f32.partialorder %v379_v33, 8.507059e+37 }
 0x573   :  { %v433_v19 = vmul.f32 %v1462_v14, %v432_v17 }
 0x575   :  { %v434_v21 = vadd.f32 %v1462_v14, %v433_v19 }
 0x576   :  { %v1464_v22 = vpop.eup %1463 }
 0x577   :  { %v438_v24 = vsel %vm437_vm6, %v1462_v14, %v434_v21  ;;  %v371_v25 = vmul.f32 %v1464_v22, %v369_v15  ;;  %vm376_vm10 = vweird.f32 %v1464_v22 }
 0x578   :  { %v443_v26 = vsel %vm440_vm7, %v442_v23, %v438_v24  ;;  %vm377_vm12 = vmor %vm375_vm11, %vm376_vm10  ;;  %vm1318_vm10 = vcmask 1041408  }
 0x579   :  { %v445_v27 = vmul.f32 2.0, %v443_v26  ;;  %v372_v29 = vsub.f32 1.0, %v371_v25 }
 0x57b   :  { %v1391_v31 = vadd.f32 -1.0, %v445_v27  ;;  %v373_v32 = vmul.f32 %v1464_v22, %v372_v29 }
 0x57d   :  { %v447_v34 = vsel %vm1634_vm8, %v1391_v31, %v443_v26  ;;  %v374_v36 = vadd.f32 %v1464_v22, %v373_v32 }
 0x57e   :  { %450 = vrot.lane.b32.xlu0 %v447_v34, %s1537_s17  ;;  %v448_v58 = vmul.f32 %v447_v34, %v1745_v50 }
 0x57f   :  { %v378_v47 = vsel %vm377_vm12, %v1464_v22, %v374_v36 }
 0x580   :  { %v383_v48 = vsel %vm380_vm13, %v382_v45, %v378_v47 }
 0x581   :  { %v385_v49 = vmul.f32 2.0, %v383_v48 }
 0x583   :  { %v1388_v51 = vadd.f32 -1.0, %v385_v49 }
 0x585   :  { %v387_v52 = vsel %vm1634_vm8, %v1388_v51, %v383_v48 }
 0x586   :  { %390 = vrot.lane.b32.xlu1 %v387_v52, %s1537_s17  ;;  %v388_v63 = vmul.f32 %v387_v52, %v1741_v46 }
 0x5f0   :  { %v451_v55 = vpop.permute.xlu0 %450 }
 0x5f1   :  { %v453_v56 = vmul.f32 %v451_v55, %v447_v34 }
 0x5f3   :  { %455 = vrot.lane.b32.xlu2 %v453_v56, %s1538_s18 }
 0x5f8   :  { %v391_v35 = vpop.permute.xlu1 %390 }
 0x5f9   :  { %v393_v57 = vmul.f32 %v391_v35, %v387_v52 }
 0x5fb   :  { %395 = vrot.lane.b32.xlu0 %v393_v57, %s1538_s18 }
 0x64d   :  { %v456_v60 = vpop.permute.xlu2 %455 }
 0x64e   :  { %v1787_v61 = vadd.f32 %v456_v60, %v448_v58 }
 0x650   :  { %1465 = vtanh.f32 %v1787_v61 }
 0x656   :  { %v1466_v62 = vpop.eup %1465 }
 0x657   :  { %461 = vrot.lane.b32.xlu1 %v1466_v62, %s1537_s17 }
 0x66d   :  { %v396_v2 = vpop.permute.xlu0 %395 }
 0x66e   :  { %v1792_v3 = vadd.f32 %v396_v2, %v388_v63 }
 0x670   :  { %1467 = vtanh.f32 %v1792_v3 }
 0x676   :  { %v1468_v6 = vpop.eup %1467 }
 0x677   :  { %401 = vrot.lane.b32.xlu2 %v1468_v6, %s1537_s17 }
 0x6c9   :  { %v462_v8 = vpop.permute.xlu1 %461 }
 0x6ca   :  { %v464_v50 = vmul.f32 %v462_v8, %v447_v34 }
 0x6cc   :  { %491 = vrot.lane.b32.xlu0 %v464_v50, %s1538_s18 }
 0x6d1   :  { %v402_v10 = vpop.permute.xlu2 %401 }
 0x6d2   :  { %v1797_v11 = vmul.f32 %v402_v10, %v387_v52 }
 0x6d4   :  { %466 = vrot.lane.b32.xlu1 %v1797_v11, %s1538_s18 }
 0x73e   :  { %v492_v12 = vpop.permute.xlu0 %491 }
 0x73f   :  { %1393 = vmatmul.msk.f32.vlgmr.msrb.gmra.mxu2 %vm106_vm9, %v492_v12  ;;  %1396 = vmatmul.msk.f32.vlgmr.msrb.gmra.mxu3 %vm106_vm9, %v492_v12 }
 0x740   :  { %957 = vmatpush.msrb.mxu3 %v1679_v41  ;;  %932 = vmatpush.msrb.mxu2 %v1649_v37 }
 0x742   :  { %958 = vmatpush.msrb.mxu3 %v1689_v42  ;;  %933 = vmatpush.msrb.mxu2 %v1654_v38 }
 0x744   :  { %959 = vmatpush.msrb.mxu3 %v1697_v43  ;;  %934 = vmatpush.msrb.mxu2 %v1661_v39 }
 0x746   :  { %v467_v46 = vpop.permute.xlu1 %466  ;;  %960 = vmatpush.msrb.mxu3 %v1705_v44  ;;  %935 = vmatpush.msrb.mxu2 %v1670_v40 }
 0x747   :  { %1392 = vmatmul.msk.f32.vlgmr.msra.gmra.mxu1 %vm106_vm9, %v467_v46 }
 0x748   :  { %867 = vmatpush.msra.mxu1 %v1587_v0 }
 0x74a   :  { %868 = vmatpush.msra.mxu1 %v1592_v1 }
 0x74c   :  { %869 = vmatpush.msra.mxu1 %v1605_v4 }
 0x74e   :  { %870 = vmatpush.msra.mxu1 %v1613_v5 }
 0x7c2   :  { %v572_v14 = vpop.f32.mrf.mxu3  ;;  %v512_v16 = vpop.f32.mrf.mxu2 }
 0x7c3   :  { %v575_v15 = vadd.f32 %v572_v14, %v78_v13 }
 0x7c4   :  { %v487_v17 = vpop.f32.mrf.mxu1 }
 0x7c5   :  { %v1397_v18 = vmul.f32 -1.442695, %v575_v15  ;;  %v513_v19 = vadd.f32 %v512_v16, %v487_v17 }
 0x7c7   :  { %1469 = vpow2.f32 %v1397_v18  ;;  %v515_v20 = vadd.f32 %v1730_v53, %v513_v19 }
 0x7c9   :  { %v1394_v21 = vmul.f32 -1.442695, %v515_v20 }
 0x7cb   :  { %1471 = vpow2.f32 %v1394_v21  ;;  %v1305_v21 = vrot.slane %v1797_v11, 6 }
 0x7cd   :  { %v1470_v22 = vpop.eup %1469 }
 0x7ce   :  { %v579_v23 = vadd.f32 1.0, %v1470_v22 }
 0x7d0   :  { %1473 = vrcp.f32 %v579_v23  ;;  %v589_v30 = vand.u32 2147483647, %v579_v23  ;;  %v591_v31 = vand.u32 2147483648, %v579_v23  ;;  %vm585_vm15 = vweird.f32 %v579_v23 }
 0x7d1   :  { %v1472_v24 = vpop.eup %1471 }
 0x7d2   :  { %v519_v25 = vadd.f32 1.0, %v1472_v24  ;;  %vm590_vm3 = vcmp.eq.f32.partialorder %v589_v30, 8.507059e+37  ;;  %v592_v45 = vor.u32 1.1754944e-38, %v591_v31  ;;  %v1319_v24 = vsel %vm1318_vm10, %v1750_v54, %v1305_v21 }
 0x7d3   :  { %v1862_v30 = vadd.f32 %v1628_v7, %v1774_v59 }
 0x7d4   :  { %1475 = vrcp.f32 %v519_v25  ;;  %v531_v47 = vand.u32 2147483648, %v519_v25  ;;  %v529_v51 = vand.u32 2147483647, %v519_v25  ;;  %vm525_vm5 = vweird.f32 %v519_v25 }
 0x7d6   :  { %v1474_v26 = vpop.eup %1473  ;;  %v532_v35 = vor.u32 1.1754944e-38, %v531_v47  ;;  %vm530_vm7 = vcmp.eq.f32.partialorder %v529_v51, 8.507059e+37 }
 0x7d7   :  { %v581_v27 = vmul.f32 %v1474_v26, %v579_v23  ;;  %vm586_vm14 = vweird.f32 %v1474_v26 }
 0x7d8   :  { %vm587_vm2 = vmor %vm585_vm15, %vm586_vm14 }
 0x7d9   :  { %v582_v9 = vsub.f32 1.0, %v581_v27 }
 0x7da   :  { %v1476_v29 = vpop.eup %1475 }
 0x7db   :  { %v583_v32 = vmul.f32 %v1474_v26, %v582_v9  ;;  %v521_v33 = vmul.f32 %v1476_v29, %v519_v25  ;;  %vm526_vm4 = vweird.f32 %v1476_v29 }
 0x7dc   :  { %vm527_vm6 = vmor %vm525_vm5, %vm526_vm4  ;;  %vm1321_vm5 = vcmask 1045504  }
 0x7dd   :  { %v584_v34 = vadd.f32 %v1474_v26, %v583_v32  ;;  %v522_v36 = vsub.f32 1.0, %v521_v33 }
 0x7df   :  { %v588_v48 = vsel %vm587_vm2, %v1474_v26, %v584_v34  ;;  %v523_v49 = vmul.f32 %v1476_v29, %v522_v36 }
 0x7e0   :  { %v593_v52 = vsel %vm590_vm3, %v592_v45, %v588_v48 }
 0x7e1   :  { %v595_v55 = vmul.f32 2.0, %v593_v52  ;;  %v524_v56 = vadd.f32 %v1476_v29, %v523_v49 }
 0x7e3   :  { %v1398_v57 = vadd.f32 -1.0, %v595_v55  ;;  %v528_v58 = vsel %vm527_vm6, %v1476_v29, %v524_v56 }
 0x7e4   :  { %v533_v60 = vsel %vm530_vm7, %v532_v35, %v528_v58 }
 0x7e5   :  { %v597_v62 = vsel %vm1634_vm8, %v1398_v57, %v593_v52  ;;  %v535_v63 = vmul.f32 2.0, %v533_v60 }
 0x7e6   :  { %600 = vrot.lane.b32.xlu0 %v597_v62, %s1537_s17  ;;  %v598_v46 = vmul.f32 %v597_v62, %v1787_v61 }
 0x7e7   :  { %v1395_v2 = vadd.f32 -1.0, %v535_v63 }
 0x7e9   :  { %v537_v6 = vsel %vm1634_vm8, %v1395_v2, %v533_v60 }
 0x7ea   :  { %540 = vrot.lane.b32.xlu2 %v537_v6, %s1537_s17  ;;  %v538_v15 = vmul.f32 %v537_v6, %v1792_v3 }
 0x844   :  { %v541_v8 = vpop.permute.xlu2 %540 }
 0x845   :  { %v543_v50 = vmul.f32 %v541_v8, %v537_v6 }
 0x847   :  { %545 = vrot.lane.b32.xlu1 %v543_v50, %s1538_s18 }
 0x858   :  { %v601_v10 = vpop.permute.xlu0 %600 }
 0x859   :  { %v603_v12 = vmul.f32 %v601_v10, %v597_v62 }
 0x85b   :  { %605 = vrot.lane.b32.xlu2 %v603_v12, %s1538_s18 }
 0x8b5   :  { %v606_v13 = vpop.permute.xlu2 %605 }
 0x8b6   :  { %v1827_v14 = vadd.f32 %v606_v13, %v598_v46 }
 0x8b8   :  { %1477 = vtanh.f32 %v1827_v14 }
 0x8b9   :  { %v546_v16 = vpop.permute.xlu1 %545 }
 0x8ba   :  { %v1831_v17 = vadd.f32 %v546_v16, %v538_v15 }
 0x8bc   :  { %1479 = vtanh.f32 %v1831_v17 }
 0x8be   :  { %v1478_v18 = vpop.eup %1477 }
 0x8bf   :  { %611 = vrot.lane.b32.xlu1 %v1478_v18, %s1537_s17 }
 0x8c2   :  { %v1480_v19 = vpop.eup %1479 }
 0x8c3   :  { %551 = vrot.lane.b32.xlu0 %v1480_v19, %s1537_s17 }
 0x931   :  { %v612_v20 = vpop.permute.xlu1 %611 }
 0x932   :  { %v614_v61 = vmul.f32 %v612_v20, %v597_v62 }
 0x934   :  { %641 = vrot.lane.b32.xlu0 %v614_v61, %s1538_s18 }
 0x935   :  { %v552_v22 = vpop.permute.xlu0 %551 }
 0x936   :  { %v554_v23 = vmul.f32 %v552_v22, %v537_v6 }
 0x938   :  { %v1307_v3 = vrot.slane %v554_v23, 4  ;;  %616 = vrot.lane.b32.xlu2 %v554_v23, %s1538_s18 }
 0x93a   :  { %v1842_v25 = vsel %vm47_vm0, %v1319_v24, %v1307_v3 }
 0x992   :  { %v617_v26 = vpop.permute.xlu2 %616 }
 0x993   :  { %1399 = vmatmul.msk.f32.vlgmr.msra.gmra.mxu0 %vm106_vm9, %v617_v26 }
 0x994   :  { %1017 = vmatpush.msra.mxu0 %v1587_v0 }
 0x996   :  { %1018 = vmatpush.msra.mxu0 %v1592_v1 }
 0x998   :  { %1019 = vmatpush.msra.mxu0 %v1605_v4 }
 0x99a   :  { %1020 = vmatpush.msra.mxu0 %v1613_v5 }
 0x9a6   :  { %v642_v11 = vpop.permute.xlu0 %641 }
 0x9a7   :  { %1400 = vmatmul.msk.f32.vlgmr.msrb.gmra.mxu1 %vm106_vm9, %v642_v11  ;;  %1403 = vmatmul.msk.f32.vlgmr.msra.gmra.mxu2 %vm106_vm9, %v642_v11 }
 0x9a8   :  { %1107 = vmatpush.msra.mxu2 %v1679_v41  ;;  %1082 = vmatpush.msrb.mxu1 %v1649_v37 }
 0x9aa   :  { %1108 = vmatpush.msra.mxu2 %v1689_v42  ;;  %1083 = vmatpush.msrb.mxu1 %v1654_v38 }
 0x9ac   :  { %1109 = vmatpush.msra.mxu2 %v1697_v43  ;;  %1084 = vmatpush.msrb.mxu1 %v1661_v39 }
 0x9ae   :  { %1110 = vmatpush.msra.mxu2 %v1705_v44  ;;  %1085 = vmatpush.msrb.mxu1 %v1670_v40 }
 0xa10   :  { %v637_v54 = vpop.f32.mrf.mxu0 }
 0xa24   :  { %v662_v27 = vpop.f32.mrf.mxu1 }
 0xa25   :  { %v663_v9 = vadd.f32 %v662_v27, %v637_v54 }
 0xa27   :  { %v665_v29 = vadd.f32 %v1730_v53, %v663_v9 }
 0xa29   :  { %v1401_v31 = vmul.f32 -1.442695, %v665_v29 }
 0xa2a   :  { %v722_v32 = vpop.f32.mrf.mxu2 }
 0xa2b   :  { %1481 = vpow2.f32 %v1401_v31  ;;  %v725_v33 = vadd.f32 %v722_v32, %v1862_v30 }
 0xa2d   :  { %v1404_v34 = vmul.f32 -1.442695, %v725_v33 }
 0xa2f   :  { %1483 = vpow2.f32 %v1404_v34 }
 0xa31   :  { %v1482_v36 = vpop.eup %1481 }
 0xa32   :  { %v669_v45 = vadd.f32 1.0, %v1482_v36 }
 0xa34   :  { %1485 = vrcp.f32 %v669_v45  ;;  %v679_v56 = vand.u32 2147483647, %v669_v45  ;;  %v681_v7 = vand.u32 2147483648, %v669_v45  ;;  %vm675_vm12 = vweird.f32 %v669_v45 }
 0xa35   :  { %v1484_v47 = vpop.eup %1483 }
 0xa36   :  { %v729_v48 = vadd.f32 1.0, %v1484_v47  ;;  %vm680_vm14 = vcmp.eq.f32.partialorder %v679_v56, 8.507059e+37  ;;  %v682_v60 = vor.u32 1.1754944e-38, %v681_v7 }
 0xa38   :  { %1487 = vrcp.f32 %v729_v48  ;;  %v741_v62 = vand.u32 2147483648, %v729_v48  ;;  %v739_v6 = vand.u32 2147483647, %v729_v48  ;;  %vm735_vm2 = vweird.f32 %v729_v48 }
 0xa3a   :  { %v1486_v49 = vpop.eup %1485  ;;  %v742_v12 = vor.u32 1.1754944e-38, %v741_v62  ;;  %vm740_vm4 = vcmp.eq.f32.partialorder %v739_v6, 8.507059e+37 }
 0xa3b   :  { %v671_v51 = vmul.f32 %v1486_v49, %v669_v45  ;;  %vm676_vm11 = vweird.f32 %v1486_v49 }
 0xa3c   :  { %vm677_vm13 = vmor %vm675_vm12, %vm676_vm11 }
 0xa3d   :  { %v672_v52 = vsub.f32 1.0, %v671_v51 }
 0xa3e   :  { %v1488_v55 = vpop.eup %1487 }
 0xa3f   :  { %v731_v59 = vmul.f32 %v1488_v55, %v729_v48  ;;  %v673_v35 = vmul.f32 %v1486_v49, %v672_v52  ;;  %vm736_vm15 = vweird.f32 %v1488_v55 }
 0xa40   :  { %vm737_vm3 = vmor %vm735_vm2, %vm736_vm15 }
 0xa41   :  { %v732_v57 = vsub.f32 1.0, %v731_v59  ;;  %v674_v58 = vadd.f32 %v1486_v49, %v673_v35 }
 0xa43   :  { %v678_v63 = vsel %vm677_vm13, %v1486_v49, %v674_v58  ;;  %v733_v2 = vmul.f32 %v1488_v55, %v732_v57 }
 0xa44   :  { %v683_v8 = vsel %vm680_vm14, %v682_v60, %v678_v63 }
 0xa45   :  { %v685_v50 = vmul.f32 2.0, %v683_v8  ;;  %v734_v10 = vadd.f32 %v1488_v55, %v733_v2 }
 0xa47   :  { %v1402_v46 = vadd.f32 -1.0, %v685_v50  ;;  %v738_v13 = vsel %vm737_vm3, %v1488_v55, %v734_v10 }
 0xa48   :  { %v743_v15 = vsel %vm740_vm4, %v742_v12, %v738_v13 }
 0xa49   :  { %v687_v16 = vsel %vm1634_vm8, %v1402_v46, %v683_v8  ;;  %v745_v18 = vmul.f32 2.0, %v743_v15 }
 0xa4a   :  { %690 = vrot.lane.b32.xlu1 %v687_v16, %s1537_s17  ;;  %v688_v54 = vmul.f32 %v687_v16, %v1831_v17 }
 0xa4b   :  { %v1405_v19 = vadd.f32 -1.0, %v745_v18 }
 0xa4d   :  { %v747_v20 = vsel %vm1634_vm8, %v1405_v19, %v743_v15 }
 0xa4e   :  { %750 = vrot.lane.b32.xlu2 %v747_v20, %s1537_s17  ;;  %v748_v3 = vmul.f32 %v747_v20, %v1827_v14 }
 0xaa8   :  { %v751_v61 = vpop.permute.xlu2 %750 }
 0xaa9   :  { %v753_v21 = vmul.f32 %v751_v61, %v747_v20 }
 0xaab   :  { %755 = vrot.lane.b32.xlu1 %v753_v21, %s1538_s18 }
 0xabc   :  { %v691_v22 = vpop.permute.xlu1 %690 }
 0xabd   :  { %v693_v23 = vmul.f32 %v691_v22, %v687_v16 }
 0xabf   :  { %695 = vrot.lane.b32.xlu0 %v693_v23, %s1538_s18 }
 0xb1d   :  { %v756_v24 = vpop.permute.xlu1 %755 }
 0xb1e   :  { %v1874_v26 = vadd.f32 %v756_v24, %v748_v3 }
 0xb20   :  { %1489 = vtanh.f32 %v1874_v26 }
 0xb26   :  { %v1490_v11 = vpop.eup %1489 }
 0xb27   :  { %761 = vrot.lane.b32.xlu0 %v1490_v11, %s1537_s17 }
 0xb31   :  { %v696_v27 = vpop.permute.xlu0 %695 }
 0xb32   :  { %v1879_v9 = vadd.f32 %v696_v27, %v688_v54 }
 0xb34   :  { %1491 = vtanh.f32 %v1879_v9 }
 0xb3a   :  { %v1492_v29 = vpop.eup %1491 }
 0xb3b   :  { %701 = vrot.lane.b32.xlu2 %v1492_v29, %s1537_s17 }
 0xb95   :  { %v702_v31 = vpop.permute.xlu2 %701 }
 0xb96   :  { %v704_v14 = vmul.f32 %v702_v31, %v687_v16 }
 0xb98   :  { %v1309_v32 = vrot.slane %v704_v14, 2  ;;  %766 = vrot.lane.b32.xlu1 %v704_v14, %s1538_s18 }
 0xb99   :  { %v762_v33 = vpop.permute.xlu0 %761 }
 0xb9a   :  { %v764_v34 = vmul.f32 %v762_v33, %v747_v20  ;;  %v1886_v36 = vsel %vm1321_vm5, %v1842_v25, %v1309_v32 }
 0xb9c   :  { %791 = vrot.lane.b32.xlu2 %v764_v34, %s1538_s18  ;;  %v80_v34 = vrot.slane %v1862_v30, 4 }
 0xbf6   :  { %v792_v17 = vpop.permute.xlu2 %791 }
 0xbf7   :  { %1407 = vmatmul.msk.f32.vlgmr.msrb.gmra.mxu0 %vm106_vm9, %v792_v17  ;;  %1410 = vmatmul.msk.f32.vlgmr.msra.gmra.mxu1 %vm106_vm9, %v792_v17 }
 0xbf8   :  { %1257 = vmatpush.msra.mxu1 %v1679_v41  ;;  %1232 = vmatpush.msrb.mxu0 %v1649_v37  ;;  %v79_v37 = vrot.slane %v1862_v30, 2 }
 0xbfa   :  { %1258 = vmatpush.msra.mxu1 %v1689_v42  ;;  %1233 = vmatpush.msrb.mxu0 %v1654_v38 }
 0xbfc   :  { %1259 = vmatpush.msra.mxu1 %v1697_v43  ;;  %1234 = vmatpush.msrb.mxu0 %v1661_v39 }
 0xbfe   :  { %1260 = vmatpush.msra.mxu1 %v1705_v44  ;;  %1235 = vmatpush.msrb.mxu0 %v1670_v40 }
 0xc0a   :  { %v767_v25 = vpop.permute.xlu1 %766 }
 0xc0b   :  { %1406 = vmatmul.msk.f32.vlgmr.msra.gmra.mxu3 %vm106_vm9, %v767_v25 }
 0xc0c   :  { %1167 = vmatpush.msra.mxu3 %v1587_v0 }
 0xc0e   :  { %1168 = vmatpush.msra.mxu3 %v1592_v1 }
 0xc10   :  { %1169 = vmatpush.msra.mxu3 %v1605_v4 }
 0xc12   :  { %1170 = vmatpush.msra.mxu3 %v1613_v5 }
 0xc74   :  { %v872_v38 = vpop.f32.mrf.mxu1  ;;  %v812_v48 = vpop.f32.mrf.mxu0 }
 0xc75   :  { %v875_v41 = vadd.f32 %v872_v38, %v79_v37 }
 0xc77   :  { %v1411_v39 = vmul.f32 -1.442695, %v875_v41 }
 0xc79   :  { %1493 = vpow2.f32 %v1411_v39 }
 0xc7f   :  { %v1494_v42 = vpop.eup %1493 }
 0xc80   :  { %v879_v43 = vadd.f32 1.0, %v1494_v42 }
 0xc82   :  { %1495 = vrcp.f32 %v879_v43  ;;  %v891_v47 = vand.u32 2147483648, %v879_v43  ;;  %v889_v1 = vand.u32 2147483647, %v879_v43  ;;  %vm885_vm7 = vweird.f32 %v879_v43 }
 0xc84   :  { %v892_v51 = vor.u32 1.1754944e-38, %v891_v47  ;;  %vm890_vm12 = vcmp.eq.f32.partialorder %v889_v1, 8.507059e+37 }
 0xc88   :  { %v1496_v40 = vpop.eup %1495 }
 0xc89   :  { %v881_v44 = vmul.f32 %v1496_v40, %v879_v43  ;;  %vm886_vm6 = vweird.f32 %v1496_v40 }
 0xc8a   :  { %vm887_vm11 = vmor %vm885_vm7, %vm886_vm6 }
 0xc8b   :  { %v882_v45 = vsub.f32 1.0, %v881_v44 }
 0xc8d   :  { %v883_v0 = vmul.f32 %v1496_v40, %v882_v45 }
 0xc8e   :  { %v787_v4 = vpop.f32.mrf.mxu3 }
 0xc8f   :  { %v813_v49 = vadd.f32 %v812_v48, %v787_v4  ;;  %v884_v5 = vadd.f32 %v1496_v40, %v883_v0 }
 0xc91   :  { %v815_v52 = vadd.f32 %v1730_v53, %v813_v49  ;;  %v888_v55 = vsel %vm887_vm11, %v1496_v40, %v884_v5 }
 0xc92   :  { %v893_v56 = vsel %vm890_vm12, %v892_v51, %v888_v55 }
 0xc93   :  { %v1408_v7 = vmul.f32 -1.442695, %v815_v52  ;;  %v895_v59 = vmul.f32 2.0, %v893_v56 }
 0xc95   :  { %1497 = vpow2.f32 %v1408_v7  ;;  %v1412_v35 = vadd.f32 -1.0, %v895_v59 }
 0xc97   :  { %v897_v57 = vsel %vm1634_vm8, %v1412_v35, %v893_v56 }
 0xc98   :  { %900 = vrot.lane.b32.xlu1 %v897_v57, %s1537_s17  ;;  %v898_v22 = vmul.f32 %v897_v57, %v1874_v26 }
 0xc9b   :  { %v1498_v58 = vpop.eup %1497 }
 0xc9c   :  { %v819_v60 = vadd.f32 1.0, %v1498_v58 }
 0xc9e   :  { %1499 = vrcp.f32 %v819_v60  ;;  %v831_v6 = vand.u32 2147483648, %v819_v60  ;;  %v829_v50 = vand.u32 2147483647, %v819_v60  ;;  %vm825_vm14 = vweird.f32 %v819_v60 }
 0xca0   :  { %v832_v12 = vor.u32 1.1754944e-38, %v831_v6  ;;  %vm830_vm2 = vcmp.eq.f32.partialorder %v829_v50, 8.507059e+37 }
 0xca4   :  { %v1500_v62 = vpop.eup %1499 }
 0xca5   :  { %v821_v63 = vmul.f32 %v1500_v62, %v819_v60  ;;  %vm826_vm13 = vweird.f32 %v1500_v62 }
 0xca6   :  { %vm827_vm15 = vmor %vm825_vm14, %vm826_vm13 }
 0xca7   :  { %v822_v2 = vsub.f32 1.0, %v821_v63 }
 0xca9   :  { %v823_v8 = vmul.f32 %v1500_v62, %v822_v2 }
 0xcab   :  { %v824_v10 = vadd.f32 %v1500_v62, %v823_v8 }
 0xcad   :  { %v828_v46 = vsel %vm827_vm15, %v1500_v62, %v824_v10 }
 0xcae   :  { %v833_v13 = vsel %vm830_vm2, %v832_v12, %v828_v46 }
 0xcaf   :  { %v835_v15 = vmul.f32 2.0, %v833_v13 }
 0xcb1   :  { %v1409_v16 = vadd.f32 -1.0, %v835_v15 }
 0xcb3   :  { %v837_v18 = vsel %vm1634_vm8, %v1409_v16, %v833_v13 }
 0xcb4   :  { %840 = vrot.lane.b32.xlu0 %v837_v18, %s1537_s17  ;;  %v838_v24 = vmul.f32 %v837_v18, %v1879_v9 }
 0xd0a   :  { %v901_v19 = vpop.permute.xlu1 %900 }
 0xd0b   :  { %v903_v20 = vmul.f32 %v901_v19, %v897_v57 }
 0xd0d   :  { %905 = vrot.lane.b32.xlu0 %v903_v20, %s1538_s18 }
 0xd26   :  { %v841_v61 = vpop.permute.xlu0 %840 }
 0xd27   :  { %v843_v21 = vmul.f32 %v841_v61, %v837_v18 }
 0xd29   :  { %845 = vrot.lane.b32.xlu2 %v843_v21, %s1538_s18 }
 0xd7f   :  { %v906_v23 = vpop.permute.xlu0 %905 }
 0xd80   :  { %v1915_v3 = vadd.f32 %v906_v23, %v898_v22 }
 0xd82   :  { %1501 = vtanh.f32 %v1915_v3 }
 0xd83   :  { %v846_v11 = vpop.permute.xlu2 %845 }
 0xd84   :  { %v1919_v54 = vadd.f32 %v846_v11, %v838_v24 }
 0xd86   :  { %1503 = vtanh.f32 %v1919_v54 }
 0xd88   :  { %v1502_v27 = vpop.eup %1501 }
 0xd89   :  { %911 = vrot.lane.b32.xlu2 %v1502_v27, %s1537_s17 }
 0xd8c   :  { %v1504_v29 = vpop.eup %1503 }
 0xd8d   :  { %851 = vrot.lane.b32.xlu1 %v1504_v29, %s1537_s17 }
 0xde3   :  { %v912_v31 = vpop.permute.xlu2 %911 }
 0xde4   :  { %v914_v26 = vmul.f32 %v912_v31, %v897_v57 }
 0xde6   :  { %941 = vrot.lane.b32.xlu1 %v914_v26, %s1538_s18 }
 0xdff   :  { %v852_v14 = vpop.permute.xlu1 %851 }
 0xe00   :  { %v1925_v32 = vmul.f32 %v852_v14, %v837_v18  ;;  %v81_v14 = vrot.slane %v1862_v30, 6 }
 0xe02   :  { %916 = vrot.lane.b32.xlu0 %v1925_v32, %s1538_s18 }
 0xe58   :  { %v942_v9 = vpop.permute.xlu1 %941 }
 0xe59   :  { %1414 = vmatmul.msk.f32.vlgmr.msrb.gmra.mxu3 %vm106_vm9, %v942_v9  ;;  %1417 = vmatmul.msk.f32.vlgmr.msra.gmra.mxu0 %vm106_vm9, %v942_v9 }
 0xe74   :  { %v917_v33 = vpop.permute.xlu0 %916 }
 0xe75   :  { %1413 = vmatmul.msk.f32.vlgmr.msrb.gmra.mxu2 %vm106_vm9, %v917_v33 }
 0xed6   :  { %v1022_v17 = vpop.f32.mrf.mxu0 }
 0xed7   :  { %v1025_v25 = vadd.f32 %v1022_v17, %v80_v34 }
 0xed9   :  { %v1418_v37 = vmul.f32 -1.442695, %v1025_v25 }
 0xedb   :  { %1505 = vpow2.f32 %v1418_v37 }
 0xedc   :  { %v962_v5 = vpop.f32.mrf.mxu3 }
 0xee1   :  { %v1506_v38 = vpop.eup %1505 }
 0xee2   :  { %v1029_v41 = vadd.f32 1.0, %v1506_v38 }
 0xee4   :  { %1507 = vrcp.f32 %v1029_v41  ;;  %v1041_v40 = vand.u32 2147483648, %v1029_v41  ;;  %v1039_v45 = vand.u32 2147483647, %v1029_v41  ;;  %vm1035_vm4 = vweird.f32 %v1029_v41 }
 0xee6   :  { %v1042_v0 = vor.u32 1.1754944e-38, %v1041_v40  ;;  %vm1040_vm7 = vcmp.eq.f32.partialorder %v1039_v45, 8.507059e+37 }
 0xeea   :  { %v1508_v39 = vpop.eup %1507 }
 0xeeb   :  { %v1031_v42 = vmul.f32 %v1508_v39, %v1029_v41  ;;  %vm1036_vm3 = vweird.f32 %v1508_v39 }
 0xeec   :  { %vm1037_vm6 = vmor %vm1035_vm4, %vm1036_vm3 }
 0xeed   :  { %v1032_v43 = vsub.f32 1.0, %v1031_v42 }
 0xeef   :  { %v1033_v44 = vmul.f32 %v1508_v39, %v1032_v43 }
 0xef1   :  { %v1034_v47 = vadd.f32 %v1508_v39, %v1033_v44 }
 0xef3   :  { %v1038_v1 = vsel %vm1037_vm6, %v1508_v39, %v1034_v47 }
 0xef4   :  { %v1043_v48 = vsel %vm1040_vm7, %v1042_v0, %v1038_v1 }
 0xef5   :  { %v1045_v4 = vmul.f32 2.0, %v1043_v48 }
 0xef7   :  { %v1419_v49 = vadd.f32 -1.0, %v1045_v4 }
 0xef8   :  { %v937_v51 = vpop.f32.mrf.mxu2 }
 0xef9   :  { %v963_v52 = vadd.f32 %v962_v5, %v937_v51  ;;  %v1047_v55 = vsel %vm1634_vm8, %v1419_v49, %v1043_v48  ;;  %v1535_v5 = vld [vmem:[%s2024_s5 + $0x1] ss:$0 sm:$0xff] }
 0xefa   :  { %1050 = vrot.lane.b32.xlu2 %v1047_v55, %s1537_s17  ;;  %v1048_v19 = vmul.f32 %v1047_v55, %v1915_v3 }
 0xefb   :  { %v965_v56 = vadd.f32 %v1730_v53, %v963_v52 }
 0xefd   :  { %v1415_v7 = vmul.f32 -1.442695, %v965_v56 }
 0xeff   :  { %1509 = vpow2.f32 %v1415_v7 }
 0xf05   :  { %v1510_v59 = vpop.eup %1509 }
 0xf06   :  { %v969_v35 = vadd.f32 1.0, %v1510_v59 }
 0xf08   :  { %1511 = vrcp.f32 %v969_v35  ;;  %v981_v62 = vand.u32 2147483648, %v969_v35  ;;  %v979_v2 = vand.u32 2147483647, %v969_v35  ;;  %vm975_vm12 = vweird.f32 %v969_v35 }
 0xf0a   :  { %v982_v8 = vor.u32 1.1754944e-38, %v981_v62  ;;  %vm980_vm14 = vcmp.eq.f32.partialorder %v979_v2, 8.507059e+37 }
 0xf0e   :  { %v1512_v57 = vpop.eup %1511 }
 0xf0f   :  { %v971_v58 = vmul.f32 %v1512_v57, %v969_v35  ;;  %vm976_vm11 = vweird.f32 %v1512_v57 }
 0xf10   :  { %vm977_vm13 = vmor %vm975_vm12, %vm976_vm11 }
 0xf11   :  { %v972_v60 = vsub.f32 1.0, %v971_v58 }
 0xf13   :  { %v973_v63 = vmul.f32 %v1512_v57, %v972_v60 }
 0xf15   :  { %v974_v6 = vadd.f32 %v1512_v57, %v973_v63 }
 0xf17   :  { %v978_v50 = vsel %vm977_vm13, %v1512_v57, %v974_v6 }
 0xf18   :  { %v983_v10 = vsel %vm980_vm14, %v982_v8, %v978_v50 }
 0xf19   :  { %v985_v53 = vmul.f32 2.0, %v983_v10 }
 0xf1b   :  { %v1416_v12 = vadd.f32 -1.0, %v985_v53 }
 0xf1d   :  { %v987_v46 = vsel %vm1634_vm8, %v1416_v12, %v983_v10 }
 0xf1e   :  { %990 = vrot.lane.b32.xlu0 %v987_v46, %s1537_s17  ;;  %v988_v22 = vmul.f32 %v987_v46, %v1919_v54 }
 0xf54   :  { %v1051_v13 = vpop.permute.xlu2 %1050 }
 0xf55   :  { %v1053_v15 = vmul.f32 %v1051_v13, %v1047_v55 }
 0xf57   :  { %1055 = vrot.lane.b32.xlu1 %v1053_v15, %s1538_s18 }
 0xf90   :  { %v991_v16 = vpop.permute.xlu0 %990 }
 0xf91   :  { %v993_v18 = vmul.f32 %v991_v16, %v987_v46 }
 0xf93   :  { %995 = vrot.lane.b32.xlu2 %v993_v18, %s1538_s18 }
 0xfc9   :  { %v1056_v20 = vpop.permute.xlu1 %1055 }
 0xfca   :  { %v1943_v61 = vadd.f32 %v1056_v20, %v1048_v19 }
 0xfcc   :  { %1513 = vtanh.f32 %v1943_v61 }
 0xfd2   :  { %v1514_v21 = vpop.eup %1513 }
 0xfd3   :  { %1061 = vrot.lane.b32.xlu0 %v1514_v21, %s1537_s17 }
 0xfed   :  { %v996_v23 = vpop.permute.xlu2 %995 }
 0xfee   :  { %v1948_v24 = vadd.f32 %v996_v23, %v988_v22 }
 0xff0   :  { %1515 = vtanh.f32 %v1948_v24 }
 0xff6   :  { %v1516_v11 = vpop.eup %1515 }
 0xff7   :  { %1001 = vrot.lane.b32.xlu1 %v1516_v11, %s1537_s17 }
0x1045   :  { %v1062_v27 = vpop.permute.xlu0 %1061 }
0x1046   :  { %v1064_v3 = vmul.f32 %v1062_v27, %v1047_v55 }
0x1048   :  { %1091 = vrot.lane.b32.xlu2 %v1064_v3, %s1538_s18 }
0x1069   :  { %v1002_v29 = vpop.permute.xlu1 %1001 }
0x106a   :  { %v1953_v31 = vmul.f32 %v1002_v29, %v987_v46 }
0x106c   :  { %1066 = vrot.lane.b32.xlu0 %v1953_v31, %s1538_s18 }
0x10a2   :  { %v1092_v26 = vpop.permute.xlu2 %1091 }
0x10a3   :  { %1421 = vmatmul.msk.f32.vlgmr.msra.gmra.mxu2 %vm106_vm9, %v1092_v26  ;;  %1424 = vmatmul.msk.f32.vlgmr.msra.gmra.mxu3 %vm106_vm9, %v1092_v26 }
0x10de   :  { %v1067_v54 = vpop.permute.xlu0 %1066 }
0x10df   :  { %1420 = vmatmul.msk.f32.vlgmr.msrb.gmra.mxu1 %vm106_vm9, %v1067_v54 }
0x1126   :  { %v1172_v9 = vpop.f32.mrf.mxu3  ;;  %v1112_v48 = vpop.f32.mrf.mxu2 }
0x1127   :  { %v1175_v33 = vadd.f32 %v1172_v9, %v81_v14 }
0x1129   :  { %v1425_v34 = vmul.f32 -1.442695, %v1175_v33 }
0x112b   :  { %1517 = vpow2.f32 %v1425_v34 }
0x1131   :  { %v1518_v17 = vpop.eup %1517 }
0x1132   :  { %v1179_v25 = vadd.f32 1.0, %v1518_v17 }
0x1134   :  { %1519 = vrcp.f32 %v1179_v25  ;;  %v1191_v39 = vand.u32 2147483648, %v1179_v25  ;;  %v1189_v43 = vand.u32 2147483647, %v1179_v25  ;;  %vm1185_vm2 = vweird.f32 %v1179_v25 }
0x1136   :  { %v1192_v44 = vor.u32 1.1754944e-38, %v1191_v39  ;;  %vm1190_vm4 = vcmp.eq.f32.partialorder %v1189_v43, 8.507059e+37 }
0x113a   :  { %v1520_v37 = vpop.eup %1519 }
0x113b   :  { %v1181_v38 = vmul.f32 %v1520_v37, %v1179_v25  ;;  %vm1186_vm15 = vweird.f32 %v1520_v37 }
0x113c   :  { %vm1187_vm3 = vmor %vm1185_vm2, %vm1186_vm15 }
0x113d   :  { %v1182_v41 = vsub.f32 1.0, %v1181_v38 }
0x113f   :  { %v1183_v42 = vmul.f32 %v1520_v37, %v1182_v41 }
0x1141   :  { %v1184_v40 = vadd.f32 %v1520_v37, %v1183_v42 }
0x1143   :  { %v1188_v45 = vsel %vm1187_vm3, %v1520_v37, %v1184_v40 }
0x1144   :  { %v1193_v30 = vsel %vm1190_vm4, %v1192_v44, %v1188_v45 }
0x1145   :  { %v1195_v47 = vmul.f32 2.0, %v1193_v30 }
0x1147   :  { %v1426_v0 = vadd.f32 -1.0, %v1195_v47 }
0x1149   :  { %v1197_v1 = vsel %vm1634_vm8, %v1426_v0, %v1193_v30 }
0x114a   :  { %1200 = vrot.lane.b32.xlu2 %v1197_v1, %s1537_s17  ;;  %v1198_v15 = vmul.f32 %v1197_v1, %v1943_v61  ;;  %v1311_v61 = vrot.slane %v1953_v31, 6 }
0x115c   :  { %v1087_v4 = vpop.f32.mrf.mxu1 }
0x115d   :  { %v1113_v49 = vadd.f32 %v1112_v48, %v1087_v4  ;;  %v1329_v4 = vld [vmem:[%s2027_s6 + $0x18] sm:$0xff] }
0x115e   :  { %1356 = vmatpush.msrb.mxu2 %v1329_v4 }
0x115f   :  { %v1115_v51 = vadd.f32 %v1535_v5, %v1113_v49  ;;  %v1328_v49 = vld [vmem:[%s2027_s6 + $0x10] sm:$0xff] }
0x1160   :  { %1357 = vmatpush.msrb.mxu2 %v1328_v49 }
0x1161   :  { %v1422_v52 = vmul.f32 -1.442695, %v1115_v51 }
0x1163   :  { %1521 = vpow2.f32 %v1422_v52 }
0x1169   :  { %v1522_v55 = vpop.eup %1521 }
0x116a   :  { %v1119_v56 = vadd.f32 1.0, %v1522_v55 }
0x116c   :  { %1523 = vrcp.f32 %v1119_v56  ;;  %v1131_v57 = vand.u32 2147483648, %v1119_v56  ;;  %v1129_v60 = vand.u32 2147483647, %v1119_v56  ;;  %vm1125_vm7 = vweird.f32 %v1119_v56 }
0x116e   :  { %v1132_v63 = vor.u32 1.1754944e-38, %v1131_v57  ;;  %vm1130_vm12 = vcmp.eq.f32.partialorder %v1129_v60, 8.507059e+37 }
0x1172   :  { %v1524_v7 = vpop.eup %1523 }
0x1173   :  { %v1121_v59 = vmul.f32 %v1524_v7, %v1119_v56  ;;  %vm1126_vm6 = vweird.f32 %v1524_v7 }
0x1174   :  { %vm1127_vm11 = vmor %vm1125_vm7, %vm1126_vm6 }
0x1175   :  { %v1122_v35 = vsub.f32 1.0, %v1121_v59 }
0x1177   :  { %v1123_v58 = vmul.f32 %v1524_v7, %v1122_v35  ;;  %v1438_v35 = vld [vmem:[%s2028_s7] ss:$0 sm:$0xff] }
0x1179   :  { %v1124_v62 = vadd.f32 %v1524_v7, %v1123_v58 }
0x117b   :  { %v1128_v2 = vsel %vm1127_vm11, %v1524_v7, %v1124_v62 }
0x117c   :  { %v1133_v6 = vsel %vm1130_vm12, %v1132_v63, %v1128_v2 }
0x117d   :  { %v1135_v8 = vmul.f32 2.0, %v1133_v6 }
0x117f   :  { %v1423_v50 = vadd.f32 -1.0, %v1135_v8 }
0x1181   :  { %v1137_v10 = vsel %vm1634_vm8, %v1423_v50, %v1133_v6 }
0x1182   :  { %1140 = vrot.lane.b32.xlu1 %v1137_v10, %s1537_s17  ;;  %v1138_v20 = vmul.f32 %v1137_v10, %v1948_v24  ;;  %v1323_v24 = vsel %vm1318_vm10, %v1925_v32, %v1311_v61 }
0x11a4   :  { %v1201_v53 = vpop.permute.xlu2 %1200 }
0x11a5   :  { %v1203_v12 = vmul.f32 %v1201_v53, %v1197_v1 }
0x11a7   :  { %1205 = vrot.lane.b32.xlu1 %v1203_v12, %s1538_s18 }
0x11f4   :  { %v1141_v46 = vpop.permute.xlu1 %1140 }
0x11f5   :  { %v1143_v13 = vmul.f32 %v1141_v46, %v1137_v10 }
0x11f7   :  { %1145 = vrot.lane.b32.xlu0 %v1143_v13, %s1538_s18 }
0x1219   :  { %v1206_v16 = vpop.permute.xlu1 %1205 }
0x121a   :  { %v1208_v18 = vadd.f32 %v1206_v16, %v1198_v15 }
0x121c   :  { %1525 = vtanh.f32 %v1208_v18 }
0x1222   :  { %v1526_v19 = vpop.eup %1525 }
0x1223   :  { %1211 = vrot.lane.b32.xlu0 %v1526_v19, %s1537_s17 }
0x1269   :  { %v1146_v21 = vpop.permute.xlu0 %1145 }
0x126a   :  { %v1148_v22 = vadd.f32 %v1146_v21, %v1138_v20 }
0x126c   :  { %1527 = vtanh.f32 %v1148_v22 }
0x1272   :  { %v1528_v23 = vpop.eup %1527 }
0x1273   :  { %1151 = vrot.lane.b32.xlu2 %v1528_v23, %s1537_s17 }
0x1295   :  { %v1212_v11 = vpop.permute.xlu0 %1211 }
0x1296   :  { %v1214_v27 = vmul.f32 %v1212_v11, %v1197_v1 }
0x1298   :  { %1241 = vrot.lane.b32.xlu2 %v1214_v27, %s1538_s18 }
0x12cd   :  { %v1152_v3 = vpop.permute.xlu2 %1151 }
0x12ce   :  { %v1154_v29 = vmul.f32 %v1152_v3, %v1137_v10 }
0x12d0   :  { %v1313_v26 = vrot.slane %v1154_v29, 4  ;;  %1216 = vrot.lane.b32.xlu1 %v1154_v29, %s1538_s18 }
0x12d2   :  { %v1982_v54 = vsel %vm47_vm0, %v1323_v24, %v1313_v26 }
0x12f2   :  { %v1242_v14 = vpop.permute.xlu2 %1241 }
0x12f3   :  { %1428 = vmatmul.msk.f32.vlgmr.msra.gmra.mxu1 %vm106_vm9, %v1242_v14 }
0x1342   :  { %v1217_v9 = vpop.permute.xlu1 %1216 }
0x1343   :  { %1427 = vmatmul.msk.f32.vlgmr.msrb.gmra.mxu0 %vm106_vm9, %v1217_v9 }
0x1370   :  { %v1262_v33 = vpop.f32.mrf.mxu1 }
0x13c0   :  { %v1237_v34 = vpop.f32.mrf.mxu0 }
0x13c1   :  { %v1263_v31 = vadd.f32 %v1262_v33, %v1237_v34 }
0x13c3   :  { %v1265_v17 = vadd.f32 %v1535_v5, %v1263_v31  ;;  %v1327_v5 = vld [vmem:[%s2027_s6 + $0x8] sm:$0xff] }
0x13c4   :  { %1358 = vmatpush.msrb.mxu2 %v1327_v5 }
0x13c5   :  { %v1429_v25 = vmul.f32 -1.442695, %v1265_v17 }
0x13c6   :  { %1359 = vmatpush.msrb.mxu2 %v1326_v28 }
0x13c7   :  { %1529 = vpow2.f32 %v1429_v25 }
0x13cd   :  { %v1530_v37 = vpop.eup %1529 }
0x13ce   :  { %v1269_v38 = vadd.f32 1.0, %v1530_v37 }
0x13d0   :  { %1531 = vrcp.f32 %v1269_v38  ;;  %v1281_v42 = vand.u32 2147483648, %v1269_v38  ;;  %v1279_v40 = vand.u32 2147483647, %v1269_v38  ;;  %vm1275_vm10 = vweird.f32 %v1269_v38 }
0x13d2   :  { %v1282_v45 = vor.u32 1.1754944e-38, %v1281_v42  ;;  %vm1280_vm14 = vcmp.eq.f32.partialorder %v1279_v40, 8.507059e+37 }
0x13d6   :  { %v1532_v41 = vpop.eup %1531 }
0x13d7   :  { %v1271_v32 = vmul.f32 %v1532_v41, %v1269_v38  ;;  %vm1276_vm0 = vweird.f32 %v1532_v41 }
0x13d8   :  { %vm1277_vm13 = vmor %vm1275_vm10, %vm1276_vm0 }
0x13d9   :  { %v1272_v39 = vsub.f32 1.0, %v1271_v32 }
0x13db   :  { %v1273_v43 = vmul.f32 %v1532_v41, %v1272_v39 }
0x13dd   :  { %v1274_v44 = vadd.f32 %v1532_v41, %v1273_v43 }
0x13df   :  { %v1278_v30 = vsel %vm1277_vm13, %v1532_v41, %v1274_v44 }
0x13e0   :  { %v1283_v47 = vsel %vm1280_vm14, %v1282_v45, %v1278_v30 }
0x13e1   :  { %v1285_v0 = vmul.f32 2.0, %v1283_v47 }
0x13e3   :  { %v1430_v1 = vadd.f32 -1.0, %v1285_v0 }
0x13e5   :  { %v1287_v48 = vsel %vm1634_vm8, %v1430_v1, %v1283_v47 }
0x13e6   :  { %1290 = vrot.lane.b32.xlu0 %v1287_v48, %s1537_s17  ;;  %v1288_v55 = vmul.f32 %v1287_v48, %v1148_v22 }
0x13ee   :  { %1336 = vrot.lane.b32.xlu0 %v1886_v36, %s1538_s18 }
0x1458   :  { %v1291_v36 = vpop.permute.xlu0 %1290 }
0x1459   :  { %v1293_v51 = vmul.f32 %v1291_v36, %v1287_v48 }
0x145b   :  { %1295 = vrot.lane.b32.xlu1 %v1293_v51, %s1538_s18 }
0x1460   :  { %v1337_v52 = vpop.permute.xlu0 %1336 }
0x1461   :  { %1431 = vmatmul.msk.f32.vlgmr.msrb.gmra.mxu2 %vm106_vm9, %v1337_v52 }
0x14cd   :  { %v1296_v56 = vpop.permute.xlu1 %1295 }
0x14ce   :  { %v1298_v7 = vadd.f32 %v1296_v56, %v1288_v55 }
0x14d0   :  { %1533 = vtanh.f32 %v1298_v7 }
0x14d6   :  { %v1534_v59 = vpop.eup %1533 }
0x14d7   :  { %1301 = vrot.lane.b32.xlu2 %v1534_v59, %s1537_s17 }
0x14e4   :  { %v1361_v57 = vpop.f32.mrf.mxu2 }
0x14e5   :  { %v1362_v58 = vadd.f32 %v1438_v35, %v1361_v57 }
0x14e7   :  { %1367 = vst.msk [vmem:[%s2029_s8] sm:$0xff] %vm40_vm1, %v1362_v58 }
0x1531   :  { %v1302_v60 = vpop.permute.xlu2 %1301 }
0x1532   :  { %v1304_v62 = vmul.f32 %v1302_v60, %v1287_v48 }
0x1534   :  { %v1316_v63 = vrot.slane %v1304_v62, 2 }
0x1536   :  { %v1325_v2 = vsel %vm1321_vm5, %v1982_v54, %v1316_v63 }
0x1537   :  { %1338 = vrot.lane.b32.xlu1 %v1325_v2, %s1538_s18 }
0x15a9   :  { %v1339_v6 = vpop.permute.xlu1 %1338 }
0x15aa   :  { %1432 = vmatmul.msk.f32.gmra.mxu2 %vm106_vm9, %v1339_v6 }
0x162d   :  { %v1364_v8 = vpop.f32.mrf.mxu2 }
0x162e   :  { %v1365_v50 = vadd.f32 %v1438_v35, %v1364_v8 }
0x1630   :  { %1368 = vst.msk [vmem:[%s2029_s8 + $0x8] sm:$0xff] %vm40_vm1, %v1365_v50 }

</bundles_post_ra>
